<compile_context>
chip_gen: v7x
topology: tpu7x:2x2x1
jax: 0.10.0
libtpu: 0.0.40
codegen_flags: <defaults>
</compile_context>

<pallas_src>
import math
import jax
import jax.numpy as jnp
from jax.experimental import pallas as pl
from jax.experimental.pallas import tpu as pltpu

# ---- synthetic model config (small stand-in for GPT-2 w/ 50257+4 vocab) ----
B, S, V, H, NH, L = 2, 8, 512, 32, 2, 2     # batch, seq, vocab, hidden, heads, layers
HD = H // NH
FFN = 4 * H
BS = B * S

PARAM_NAMES = ["wte", "wpe", "ln1g", "ln1b", "wqkv", "bqkv", "wproj", "bproj",
               "ln2g", "ln2b", "wfc", "bfc", "wmp", "bmp", "lnfg", "lnfb"]
BF16_PARAMS = {"wqkv", "wproj", "wfc", "wmp"}   # fed to the kernel as bf16
# wte stays f32 so the dynamic row gather stays on the plain 32-bit path; it is cast
# to bf16 in-kernel for the tied LM-head matmul.


def _layernorm(h, g, b):
    mu = jnp.mean(h, axis=-1, keepdims=True)
    var = jnp.mean((h - mu) ** 2, axis=-1, keepdims=True)
    return (h - mu) * jax.lax.rsqrt(var + 1e-5) * g + b


def _gelu_new(h):   # GPT-2 gelu_new
    return 0.5 * h * (1.0 + jnp.tanh(0.7978845608028654 * (h + 0.044715 * h ** 3)))


def dialog_lm_kernel(ids_ref,                        # scalar prefetch: (BS,) int32 in SMEM
                     labels_ref, amask_ref,          # (BS,1) int32 shifted labels, (1,BS) f32
                     wte_ref, wpe_ref, ln1g_ref, ln1b_ref,
                     wqkv_ref, bqkv_ref, wproj_ref, bproj_ref,
                     ln2g_ref, ln2b_ref, wfc_ref, bfc_ref,
                     wmp_ref, bmp_ref, lnfg_ref, lnfb_ref,
                     logits_ref, stats_ref):
    bf16 = jnp.bfloat16

    # ---- token embedding: scalar-prefetched id gather (no one-hot) ----
    rows = [wte_ref[pl.ds(ids_ref[i], 1), :] for i in range(BS)]
    emb = jnp.concatenate(rows, axis=0)                                # (BS, H) f32
    pos = jnp.concatenate([wpe_ref[...]] * B, axis=0)                  # (BS, H)
    x = emb + pos

    # ---- additive attention bias: block-diagonal (per-sample) causal + key padding ----
    r = jax.lax.broadcasted_iota(jnp.int32, (BS, BS), 0)
    c = jax.lax.broadcasted_iota(jnp.int32, (BS, BS), 1)
    same = None
    for b in range(B):                                                 # static, tiny (B=2)
        blk = ((r >= b * S) & (r < (b + 1) * S)) & ((c >= b * S) & (c < (b + 1) * S))
        same = blk if same is None else (same | blk)
    allowed = same & (c <= r)
    key_bias = (amask_ref[...] - 1.0) * 1e9                            # (1, BS): 0 keep / -1e9 pad
    bias = jnp.where(allowed, 0.0, -1e9) + key_bias                    # (BS, BS)
    scale = 1.0 / math.sqrt(HD)

    # ---- transformer blocks (weights sliced per layer from their Refs) ----
    for l in range(L):
        xn = _layernorm(x, ln1g_ref[l], ln1b_ref[l])
        qkv = jnp.dot(xn.astype(bf16), wqkv_ref[l],
                      preferred_element_type=jnp.float32) + bqkv_ref[l]   # (BS, 3H)
        heads = []
        for h in range(NH):
            q = qkv[:, h * HD:(h + 1) * HD]
            k = qkv[:, H + h * HD:H + (h + 1) * HD]
            v = qkv[:, 2 * H + h * HD:2 * H + (h + 1) * HD]
            s = jax.lax.dot_general(q.astype(bf16), k.astype(bf16),
                                    (((1,), (1,)), ((), ())),
                                    preferred_element_type=jnp.float32) * scale + bias
            m = jnp.max(s, axis=-1, keepdims=True)
            p = jnp.exp(s - m)
            p = p * pl.reciprocal(jnp.sum(p, axis=-1, keepdims=True), approx=True)
            heads.append(jnp.dot(p.astype(bf16), v.astype(bf16),
                                 preferred_element_type=jnp.float32))     # (BS, HD)
        attn = jnp.concatenate(heads, axis=-1)                            # (BS, H)
        x = x + jnp.dot(attn.astype(bf16), wproj_ref[l],
                        preferred_element_type=jnp.float32) + bproj_ref[l]

        xn2 = _layernorm(x, ln2g_ref[l], ln2b_ref[l])
        hmid = jnp.dot(xn2.astype(bf16), wfc_ref[l],
                       preferred_element_type=jnp.float32) + bfc_ref[l]
        hmid = _gelu_new(hmid)
        x = x + jnp.dot(hmid.astype(bf16), wmp_ref[l],
                        preferred_element_type=jnp.float32) + bmp_ref[l]

    # ---- tied LM head ----
    xf = _layernorm(x, lnfg_ref[...], lnfb_ref[...])
    logits = jax.lax.dot_general(xf.astype(bf16), wte_ref[...].astype(bf16),
                                 (((1,), (1,)), ((), ())),
                                 preferred_element_type=jnp.float32)      # (BS, V)
    logits_ref[...] = logits

    # ---- shifted cross-entropy via masked lane-select (labels pre-shifted, -100 = ignore) ----
    labels_v = labels_ref[...]                                            # (BS, 1) int32
    valid = (labels_v >= 0).astype(jnp.float32)                           # (BS, 1)
    tgt = jnp.maximum(labels_v, 0)
    lane = jax.lax.broadcasted_iota(jnp.int32, (BS, V), 1)
    sel = (lane == tgt).astype(jnp.float32)                               # in-kernel one-hot (no DMA)
    correct = jnp.sum(logits * sel, axis=-1, keepdims=True)               # (BS, 1)
    m = jnp.max(logits, axis=-1, keepdims=True)
    lse = jnp.log(jnp.sum(jnp.exp(logits - m), axis=-1, keepdims=True)) + m
    loss_sum = jnp.sum(valid * (lse - correct), keepdims=True)            # (1, 1)
    count = jnp.sum(valid, keepdims=True)                                 # (1, 1)

    lane128 = jax.lax.broadcasted_iota(jnp.int32, (1, 128), 1)
    stats_ref[...] = (jnp.where(lane128 == 0, loss_sum, 0.0) +
                      jnp.where(lane128 == 1, count, 0.0))                # lane-dense stats slab


def init_params(key):
    std = 0.02
    ks = jax.random.split(key, 8)
    return {
        "wte": jax.random.normal(ks[0], (V, H), jnp.float32) * std,
        "wpe": jax.random.normal(ks[1], (S, H), jnp.float32) * std,
        "ln1g": jnp.ones((L, 1, H), jnp.float32),
        "ln1b": jnp.zeros((L, 1, H), jnp.float32),
        "wqkv": jax.random.normal(ks[2], (L, H, 3 * H), jnp.float32) * std,
        "bqkv": jnp.zeros((L, 1, 3 * H), jnp.float32),
        "wproj": jax.random.normal(ks[3], (L, H, H), jnp.float32) * std,
        "bproj": jnp.zeros((L, 1, H), jnp.float32),
        "ln2g": jnp.ones((L, 1, H), jnp.float32),
        "ln2b": jnp.zeros((L, 1, H), jnp.float32),
        "wfc": jax.random.normal(ks[4], (L, H, FFN), jnp.float32) * std,
        "bfc": jnp.zeros((L, 1, FFN), jnp.float32),
        "wmp": jax.random.normal(ks[5], (L, FFN, H), jnp.float32) * std,
        "bmp": jnp.zeros((L, 1, H), jnp.float32),
        "lnfg": jnp.ones((1, H), jnp.float32),
        "lnfb": jnp.zeros((1, H), jnp.float32),
    }


def dialog_model_forward(params, input_ids, labels, attention_mask):
    # HF causal-LM shift done by re-indexing the labels (no in-kernel slicing):
    # position t is scored against labels[t+1]; last position gets ignore_index.
    ids_flat = input_ids.reshape(BS).astype(jnp.int32)
    shifted = jnp.concatenate(
        [labels[:, 1:], jnp.full((B, 1), -100, labels.dtype)], axis=1)
    labels2d = shifted.reshape(BS, 1).astype(jnp.int32)
    amask = attention_mask.astype(jnp.float32).reshape(1, BS)

    weight_list = []
    for name in PARAM_NAMES:
        w = params[name]
        if name in BF16_PARAMS:
            w = w.astype(jnp.bfloat16)
        weight_list.append(w)

    def fullspec(shape):   # full-array block, constant index (grid is a single step)
        n = len(shape)
        return pl.BlockSpec(tuple(shape), lambda i, ids, n=n: (0,) * n)

    in_specs = [fullspec(labels2d.shape), fullspec(amask.shape)]
    in_specs += [fullspec(w.shape) for w in weight_list]
    out_shape = (jax.ShapeDtypeStruct((BS, V), jnp.float32),
                 jax.ShapeDtypeStruct((1, 128), jnp.float32))
    out_specs = (fullspec((BS, V)), fullspec((1, 128)))

    logits_flat, stats = pl.pallas_call(
        dialog_lm_kernel,
        out_shape=out_shape,
        grid_spec=pltpu.PrefetchScalarGridSpec(
            num_scalar_prefetch=1, grid=(1,),
            in_specs=in_specs, out_specs=out_specs),
        compiler_params=pltpu.CompilerParams(dimension_semantics=("arbitrary",)),
    )(ids_flat, labels2d, amask, *weight_list)

    loss = stats[0, 0] / jnp.maximum(stats[0, 1], 1.0)
    logits = logits_flat.reshape(B, S, V)
    # TODO(synk): per-layer hidden_states (output_hidden_states=True) not surfaced.
    return {"loss": loss, "model_output": {"logits": logits}}


def reference_forward(params, input_ids, labels, attention_mask):
    """Pure-JAX f32 reference with identical math (per-sample, vmapped)."""
    def single(ids, lab, am):
        x = params["wte"][ids] + params["wpe"]                       # (S, H)
        key_bias = (am.astype(jnp.float32)[None, :] - 1.0) * 1e9
        row = jnp.arange(S)[:, None]
        col = jnp.arange(S)[None, :]
        bias = jnp.where(col <= row, 0.0, -1e9) + key_bias
        scale = 1.0 / math.sqrt(HD)
        for l in range(L):
            xn = _layernorm(x, params["ln1g"][l], params["ln1b"][l])
            qkv = xn @ params["wqkv"][l] + params["bqkv"][l]
            heads = []
            for h in range(NH):
                q = qkv[:, h * HD:(h + 1) * HD]
                k = qkv[:, H + h * HD:H + (h + 1) * HD]
                v = qkv[:, 2 * H + h * HD:2 * H + (h + 1) * HD]
                s = q @ k.T * scale + bias
                heads.append(jax.nn.softmax(s, axis=-1) @ v)
            attn = jnp.concatenate(heads, axis=-1)
            x = x + attn @ params["wproj"][l] + params["bproj"][l]
            xn2 = _layernorm(x, params["ln2g"][l], params["ln2b"][l])
            hm = _gelu_new(xn2 @ params["wfc"][l] + params["bfc"][l])
            x = x + hm @ params["wmp"][l] + params["bmp"][l]
        xf = _layernorm(x, params["lnfg"], params["lnfb"])
        logits = xf @ params["wte"].T                                # (S, V)
        lg = logits[:-1]
        tg = lab[1:]
        valid = tg >= 0
        tgt = jnp.maximum(tg, 0)
        lse = jax.nn.logsumexp(lg, axis=-1)
        correct = jnp.take_along_axis(lg, tgt[:, None], axis=1)[:, 0]
        loss_sum = jnp.sum(jnp.where(valid, lse - correct, 0.0))
        count = jnp.sum(valid.astype(jnp.float32))
        return logits, loss_sum, count

    logits, loss_sum, count = jax.vmap(single)(input_ids, labels, attention_mask)
    loss = jnp.sum(loss_sum) / jnp.maximum(jnp.sum(count), 1.0)
    return {"loss": loss, "model_output": {"logits": logits}}


if __name__ == "__main__":
    key = jax.random.PRNGKey(0)
    pkey, dkey = jax.random.split(key)
    params = init_params(pkey)

    input_ids = jax.random.randint(dkey, (B, S), 0, V, dtype=jnp.int32)
    labels = input_ids                                   # standard LM training target
    attention_mask = jnp.ones((B, S), jnp.int32)

    out = dialog_model_forward(params, input_ids, labels, attention_mask)
    jax.block_until_ready(out)

    ref = reference_forward(params, input_ids, labels, attention_mask)
    jax.block_until_ready(ref)

    assert jnp.allclose(out["model_output"]["logits"],
                        ref["model_output"]["logits"], atol=1e-2, rtol=1e-2)
    assert jnp.allclose(out["loss"], ref["loss"], atol=1e-2, rtol=1e-2)
    print("KERNEL_OK")
</pallas_src>

<mosaic_0001>
module attributes {stable_mosaic.version = 11 : i64} {
  func.func @dialog_lm_kernel(%arg0: i32, %arg1: memref<16xi32, #tpu.memory_space<smem>>, %arg2: memref<16x1xi32, #tpu.memory_space<vmem>>, %arg3: memref<1x16xf32, #tpu.memory_space<vmem>>, %arg4: memref<512x32xf32, #tpu.memory_space<vmem>>, %arg5: memref<8x32xf32, #tpu.memory_space<vmem>>, %arg6: memref<2x1x32xf32, #tpu.memory_space<vmem>>, %arg7: memref<2x1x32xf32, #tpu.memory_space<vmem>>, %arg8: memref<2x32x96xbf16, #tpu.memory_space<vmem>>, %arg9: memref<2x1x96xf32, #tpu.memory_space<vmem>>, %arg10: memref<2x32x32xbf16, #tpu.memory_space<vmem>>, %arg11: memref<2x1x32xf32, #tpu.memory_space<vmem>>, %arg12: memref<2x1x32xf32, #tpu.memory_space<vmem>>, %arg13: memref<2x1x32xf32, #tpu.memory_space<vmem>>, %arg14: memref<2x32x128xbf16, #tpu.memory_space<vmem>>, %arg15: memref<2x1x128xf32, #tpu.memory_space<vmem>>, %arg16: memref<2x128x32xbf16, #tpu.memory_space<vmem>>, %arg17: memref<2x1x32xf32, #tpu.memory_space<vmem>>, %arg18: memref<1x32xf32, #tpu.memory_space<vmem>>, %arg19: memref<1x32xf32, #tpu.memory_space<vmem>>, %arg20: memref<16x512xf32, #tpu.memory_space<vmem>>, %arg21: memref<1x128xf32, #tpu.memory_space<vmem>>) attributes {dimension_semantics = [#tpu.dimension_semantics<arbitrary>], iteration_bounds = array<i64: 1>, scalar_prefetch = 1 : i64, scratch_operands = 0 : i64, tpu.core_type = #tpu.core_type<tc>, window_params = [{pipeline_mode = #tpu.pipeline_mode<synchronous>, transform_indices = @transform_0, window_bounds = array<i64: 16, 1>}, {pipeline_mode = #tpu.pipeline_mode<synchronous>, transform_indices = @transform_1, window_bounds = array<i64: 1, 16>}, {pipeline_mode = #tpu.pipeline_mode<synchronous>, transform_indices = @transform_2, window_bounds = array<i64: 512, 32>}, {pipeline_mode = #tpu.pipeline_mode<synchronous>, transform_indices = @transform_3, window_bounds = array<i64: 8, 32>}, {pipeline_mode = #tpu.pipeline_mode<synchronous>, transform_indices = @transform_4, window_bounds = array<i64: 2, 1, 32>}, {pipeline_mode = #tpu.pipeline_mode<synchronous>, transform_indices = @transform_5, window_bounds = array<i64: 2, 1, 32>}, {pipeline_mode = #tpu.pipeline_mode<synchronous>, transform_indices = @transform_6, window_bounds = array<i64: 2, 32, 96>}, {pipeline_mode = #tpu.pipeline_mode<synchronous>, transform_indices = @transform_7, window_bounds = array<i64: 2, 1, 96>}, {pipeline_mode = #tpu.pipeline_mode<synchronous>, transform_indices = @transform_8, window_bounds = array<i64: 2, 32, 32>}, {pipeline_mode = #tpu.pipeline_mode<synchronous>, transform_indices = @transform_9, window_bounds = array<i64: 2, 1, 32>}, {pipeline_mode = #tpu.pipeline_mode<synchronous>, transform_indices = @transform_10, window_bounds = array<i64: 2, 1, 32>}, {pipeline_mode = #tpu.pipeline_mode<synchronous>, transform_indices = @transform_11, window_bounds = array<i64: 2, 1, 32>}, {pipeline_mode = #tpu.pipeline_mode<synchronous>, transform_indices = @transform_12, window_bounds = array<i64: 2, 32, 128>}, {pipeline_mode = #tpu.pipeline_mode<synchronous>, transform_indices = @transform_13, window_bounds = array<i64: 2, 1, 128>}, {pipeline_mode = #tpu.pipeline_mode<synchronous>, transform_indices = @transform_14, window_bounds = array<i64: 2, 128, 32>}, {pipeline_mode = #tpu.pipeline_mode<synchronous>, transform_indices = @transform_15, window_bounds = array<i64: 2, 1, 32>}, {pipeline_mode = #tpu.pipeline_mode<synchronous>, transform_indices = @transform_16, window_bounds = array<i64: 1, 32>}, {pipeline_mode = #tpu.pipeline_mode<synchronous>, transform_indices = @transform_17, window_bounds = array<i64: 1, 32>}, {pipeline_mode = #tpu.pipeline_mode<synchronous>, transform_indices = @transform_18, window_bounds = array<i64: 16, 512>}, {pipeline_mode = #tpu.pipeline_mode<synchronous>, transform_indices = @transform_19, window_bounds = array<i64: 1, 128>}]} {
    %c0 = arith.constant 0 : index
    %0 = memref.load %arg1[%c0] : memref<16xi32, #tpu.memory_space<smem>>
    %1 = arith.index_cast %0 : i32 to index
    %c0_0 = arith.constant 0 : index
    %2 = vector.load %arg4[%1, %c0_0] : memref<512x32xf32, #tpu.memory_space<vmem>>, vector<1x32xf32>
    %c1 = arith.constant 1 : index
    %3 = memref.load %arg1[%c1] : memref<16xi32, #tpu.memory_space<smem>>
    %4 = arith.index_cast %3 : i32 to index
    %c0_1 = arith.constant 0 : index
    %5 = vector.load %arg4[%4, %c0_1] : memref<512x32xf32, #tpu.memory_space<vmem>>, vector<1x32xf32>
    %c2 = arith.constant 2 : index
    %6 = memref.load %arg1[%c2] : memref<16xi32, #tpu.memory_space<smem>>
    %7 = arith.index_cast %6 : i32 to index
    %c0_2 = arith.constant 0 : index
    %8 = vector.load %arg4[%7, %c0_2] : memref<512x32xf32, #tpu.memory_space<vmem>>, vector<1x32xf32>
    %c3 = arith.constant 3 : index
    %9 = memref.load %arg1[%c3] : memref<16xi32, #tpu.memory_space<smem>>
    %10 = arith.index_cast %9 : i32 to index
    %c0_3 = arith.constant 0 : index
    %11 = vector.load %arg4[%10, %c0_3] : memref<512x32xf32, #tpu.memory_space<vmem>>, vector<1x32xf32>
    %c4 = arith.constant 4 : index
    %12 = memref.load %arg1[%c4] : memref<16xi32, #tpu.memory_space<smem>>
    %13 = arith.index_cast %12 : i32 to index
    %c0_4 = arith.constant 0 : index
    %14 = vector.load %arg4[%13, %c0_4] : memref<512x32xf32, #tpu.memory_space<vmem>>, vector<1x32xf32>
    %c5 = arith.constant 5 : index
    %15 = memref.load %arg1[%c5] : memref<16xi32, #tpu.memory_space<smem>>
    %16 = arith.index_cast %15 : i32 to index
    %c0_5 = arith.constant 0 : index
    %17 = vector.load %arg4[%16, %c0_5] : memref<512x32xf32, #tpu.memory_space<vmem>>, vector<1x32xf32>
    %c6 = arith.constant 6 : index
    %18 = memref.load %arg1[%c6] : memref<16xi32, #tpu.memory_space<smem>>
    %19 = arith.index_cast %18 : i32 to index
    %c0_6 = arith.constant 0 : index
    %20 = vector.load %arg4[%19, %c0_6] : memref<512x32xf32, #tpu.memory_space<vmem>>, vector<1x32xf32>
    %c7 = arith.constant 7 : index
    %21 = memref.load %arg1[%c7] : memref<16xi32, #tpu.memory_space<smem>>
    %22 = arith.index_cast %21 : i32 to index
    %c0_7 = arith.constant 0 : index
    %23 = vector.load %arg4[%22, %c0_7] : memref<512x32xf32, #tpu.memory_space<vmem>>, vector<1x32xf32>
    %c8 = arith.constant 8 : index
    %24 = memref.load %arg1[%c8] : memref<16xi32, #tpu.memory_space<smem>>
    %25 = arith.index_cast %24 : i32 to index
    %c0_8 = arith.constant 0 : index
    %26 = vector.load %arg4[%25, %c0_8] : memref<512x32xf32, #tpu.memory_space<vmem>>, vector<1x32xf32>
    %c9 = arith.constant 9 : index
    %27 = memref.load %arg1[%c9] : memref<16xi32, #tpu.memory_space<smem>>
    %28 = arith.index_cast %27 : i32 to index
    %c0_9 = arith.constant 0 : index
    %29 = vector.load %arg4[%28, %c0_9] : memref<512x32xf32, #tpu.memory_space<vmem>>, vector<1x32xf32>
    %c10 = arith.constant 10 : index
    %30 = memref.load %arg1[%c10] : memref<16xi32, #tpu.memory_space<smem>>
    %31 = arith.index_cast %30 : i32 to index
    %c0_10 = arith.constant 0 : index
    %32 = vector.load %arg4[%31, %c0_10] : memref<512x32xf32, #tpu.memory_space<vmem>>, vector<1x32xf32>
    %c11 = arith.constant 11 : index
    %33 = memref.load %arg1[%c11] : memref<16xi32, #tpu.memory_space<smem>>
    %34 = arith.index_cast %33 : i32 to index
    %c0_11 = arith.constant 0 : index
    %35 = vector.load %arg4[%34, %c0_11] : memref<512x32xf32, #tpu.memory_space<vmem>>, vector<1x32xf32>
    %c12 = arith.constant 12 : index
    %36 = memref.load %arg1[%c12] : memref<16xi32, #tpu.memory_space<smem>>
    %37 = arith.index_cast %36 : i32 to index
    %c0_12 = arith.constant 0 : index
    %38 = vector.load %arg4[%37, %c0_12] : memref<512x32xf32, #tpu.memory_space<vmem>>, vector<1x32xf32>
    %c13 = arith.constant 13 : index
    %39 = memref.load %arg1[%c13] : memref<16xi32, #tpu.memory_space<smem>>
    %40 = arith.index_cast %39 : i32 to index
    %c0_13 = arith.constant 0 : index
    %41 = vector.load %arg4[%40, %c0_13] : memref<512x32xf32, #tpu.memory_space<vmem>>, vector<1x32xf32>
    %c14 = arith.constant 14 : index
    %42 = memref.load %arg1[%c14] : memref<16xi32, #tpu.memory_space<smem>>
    %43 = arith.index_cast %42 : i32 to index
    %c0_14 = arith.constant 0 : index
    %44 = vector.load %arg4[%43, %c0_14] : memref<512x32xf32, #tpu.memory_space<vmem>>, vector<1x32xf32>
    %c15 = arith.constant 15 : index
    %45 = memref.load %arg1[%c15] : memref<16xi32, #tpu.memory_space<smem>>
    %46 = arith.index_cast %45 : i32 to index
    %c0_15 = arith.constant 0 : index
    %47 = vector.load %arg4[%46, %c0_15] : memref<512x32xf32, #tpu.memory_space<vmem>>, vector<1x32xf32>
    %48 = tpu.concatenate %2, %5, %8, %11, %14, %17, %20, %23, %26, %29, %32, %35, %38, %41, %44, %47 in 0 : vector<1x32xf32>, vector<1x32xf32>, vector<1x32xf32>, vector<1x32xf32>, vector<1x32xf32>, vector<1x32xf32>, vector<1x32xf32>, vector<1x32xf32>, vector<1x32xf32>, vector<1x32xf32>, vector<1x32xf32>, vector<1x32xf32>, vector<1x32xf32>, vector<1x32xf32>, vector<1x32xf32>, vector<1x32xf32> -> vector<16x32xf32>
    %c0_16 = arith.constant 0 : index
    %c0_17 = arith.constant 0 : index
    %49 = vector.load %arg5[%c0_16, %c0_17] : memref<8x32xf32, #tpu.memory_space<vmem>>, vector<8x32xf32>
    %50 = tpu.concatenate %49, %49 in 0 : vector<8x32xf32>, vector<8x32xf32> -> vector<16x32xf32>
    %51 = arith.addf %48, %50 : vector<16x32xf32>
    %52 = tpu.iota {dimensions = array<i32: 0>} : vector<16x16xi32>
    %53 = tpu.iota {dimensions = array<i32: 1>} : vector<16x16xi32>
    %c0_i32 = arith.constant 0 : i32
    %54 = vector.broadcast %c0_i32 : i32 to vector<16x16xi32>
    %55 = arith.cmpi sge, %52, %54 : vector<16x16xi32>
    %c8_i32 = arith.constant 8 : i32
    %56 = vector.broadcast %c8_i32 : i32 to vector<16x16xi32>
    %57 = arith.cmpi slt, %52, %56 : vector<16x16xi32>
    %58 = arith.andi %55, %57 : vector<16x16xi1>
    %c0_i32_18 = arith.constant 0 : i32
    %59 = vector.broadcast %c0_i32_18 : i32 to vector<16x16xi32>
    %60 = arith.cmpi sge, %53, %59 : vector<16x16xi32>
    %c8_i32_19 = arith.constant 8 : i32
    %61 = vector.broadcast %c8_i32_19 : i32 to vector<16x16xi32>
    %62 = arith.cmpi slt, %53, %61 : vector<16x16xi32>
    %63 = arith.andi %60, %62 : vector<16x16xi1>
    %64 = arith.andi %58, %63 : vector<16x16xi1>
    %c8_i32_20 = arith.constant 8 : i32
    %65 = vector.broadcast %c8_i32_20 : i32 to vector<16x16xi32>
    %66 = arith.cmpi sge, %52, %65 : vector<16x16xi32>
    %c16_i32 = arith.constant 16 : i32
    %67 = vector.broadcast %c16_i32 : i32 to vector<16x16xi32>
    %68 = arith.cmpi slt, %52, %67 : vector<16x16xi32>
    %69 = arith.andi %66, %68 : vector<16x16xi1>
    %c8_i32_21 = arith.constant 8 : i32
    %70 = vector.broadcast %c8_i32_21 : i32 to vector<16x16xi32>
    %71 = arith.cmpi sge, %53, %70 : vector<16x16xi32>
    %c16_i32_22 = arith.constant 16 : i32
    %72 = vector.broadcast %c16_i32_22 : i32 to vector<16x16xi32>
    %73 = arith.cmpi slt, %53, %72 : vector<16x16xi32>
    %74 = arith.andi %71, %73 : vector<16x16xi1>
    %75 = arith.andi %69, %74 : vector<16x16xi1>
    %76 = arith.ori %64, %75 : vector<16x16xi1>
    %77 = arith.cmpi sle, %53, %52 : vector<16x16xi32>
    %78 = arith.andi %76, %77 : vector<16x16xi1>
    %c0_23 = arith.constant 0 : index
    %c0_24 = arith.constant 0 : index
    %79 = vector.load %arg3[%c0_23, %c0_24] : memref<1x16xf32, #tpu.memory_space<vmem>>, vector<1x16xf32>
    %cst = arith.constant 1.000000e+00 : f32
    %80 = vector.broadcast %cst : f32 to vector<1x16xf32>
    %81 = arith.subf %79, %80 : vector<1x16xf32>
    %cst_25 = arith.constant 1.000000e+09 : f32
    %82 = vector.broadcast %cst_25 : f32 to vector<1x16xf32>
    %83 = arith.mulf %81, %82 : vector<1x16xf32>
    %cst_26 = arith.constant 0.000000e+00 : f32
    %cst_27 = arith.constant -1.000000e+09 : f32
    %84 = vector.broadcast %cst_26 : f32 to vector<16x16xf32>
    %85 = vector.broadcast %cst_27 : f32 to vector<16x16xf32>
    %86 = arith.select %78, %84, %85 : vector<16x16xi1>, vector<16x16xf32>
    %87 = vector.broadcast %83 : vector<1x16xf32> to vector<16x16xf32>
    %88 = arith.addf %86, %87 : vector<16x16xf32>
    %c0_28 = arith.constant 0 : index
    %c0_29 = arith.constant 0 : index
    %c0_30 = arith.constant 0 : index
    %89 = vector.load %arg6[%c0_28, %c0_29, %c0_30] : memref<2x1x32xf32, #tpu.memory_space<vmem>>, vector<1x1x32xf32>
    %90 = vector.shape_cast %89 : vector<1x1x32xf32> to vector<1x32xf32>
    %c0_31 = arith.constant 0 : index
    %c0_32 = arith.constant 0 : index
    %c0_33 = arith.constant 0 : index
    %91 = vector.load %arg7[%c0_31, %c0_32, %c0_33] : memref<2x1x32xf32, #tpu.memory_space<vmem>>, vector<1x1x32xf32>
    %92 = vector.shape_cast %91 : vector<1x1x32xf32> to vector<1x32xf32>
    %cst_34 = arith.constant dense<0.000000e+00> : vector<16xf32>
    %93 = vector.multi_reduction <add>, %51, %cst_34 [1] : vector<16x32xf32> to vector<16xf32>
    %94 = vector.shape_cast %93 : vector<16xf32> to vector<16x1xf32>
    %cst_35 = arith.constant 3.200000e+01 : f32
    %95 = vector.broadcast %cst_35 : f32 to vector<16x1xf32>
    %96 = arith.divf %94, %95 : vector<16x1xf32>
    %97 = vector.broadcast %96 : vector<16x1xf32> to vector<16x32xf32>
    %98 = arith.subf %51, %97 : vector<16x32xf32>
    %99 = arith.mulf %98, %98 : vector<16x32xf32>
    %cst_36 = arith.constant dense<0.000000e+00> : vector<16xf32>
    %100 = vector.multi_reduction <add>, %99, %cst_36 [1] : vector<16x32xf32> to vector<16xf32>
    %101 = vector.shape_cast %100 : vector<16xf32> to vector<16x1xf32>
    %cst_37 = arith.constant 3.200000e+01 : f32
    %102 = vector.broadcast %cst_37 : f32 to vector<16x1xf32>
    %103 = arith.divf %101, %102 : vector<16x1xf32>
    %104 = vector.broadcast %96 : vector<16x1xf32> to vector<16x32xf32>
    %105 = arith.subf %51, %104 : vector<16x32xf32>
    %cst_38 = arith.constant 9.99999974E-6 : f32
    %106 = vector.broadcast %cst_38 : f32 to vector<16x1xf32>
    %107 = arith.addf %103, %106 : vector<16x1xf32>
    %108 = math.rsqrt %107 : vector<16x1xf32>
    %109 = vector.broadcast %108 : vector<16x1xf32> to vector<16x32xf32>
    %110 = arith.mulf %105, %109 : vector<16x32xf32>
    %111 = vector.broadcast %90 : vector<1x32xf32> to vector<16x32xf32>
    %112 = arith.mulf %110, %111 : vector<16x32xf32>
    %113 = vector.broadcast %92 : vector<1x32xf32> to vector<16x32xf32>
    %114 = arith.addf %112, %113 : vector<16x32xf32>
    %115 = arith.truncf %114 : vector<16x32xf32> to vector<16x32xbf16>
    %c0_39 = arith.constant 0 : index
    %c0_40 = arith.constant 0 : index
    %c0_41 = arith.constant 0 : index
    %116 = vector.load %arg8[%c0_39, %c0_40, %c0_41] : memref<2x32x96xbf16, #tpu.memory_space<vmem>>, vector<1x32x96xbf16>
    %117 = vector.shape_cast %116 : vector<1x32x96xbf16> to vector<32x96xbf16>
    %cst_42 = arith.constant dense<0.000000e+00> : vector<16x96xf32>
    %118 = tpu.matmul %115, %117, %cst_42 {dimension_numbers = #tpu.dot_dimension_numbers<[1], [0], [0], [1], [0, 0, 1, 1], [], []>} : vector<16x32xbf16>, vector<32x96xbf16>, vector<16x96xf32> -> vector<16x96xf32>
    %c0_43 = arith.constant 0 : index
    %c0_44 = arith.constant 0 : index
    %c0_45 = arith.constant 0 : index
    %119 = vector.load %arg9[%c0_43, %c0_44, %c0_45] : memref<2x1x96xf32, #tpu.memory_space<vmem>>, vector<1x1x96xf32>
    %120 = vector.shape_cast %119 : vector<1x1x96xf32> to vector<1x96xf32>
    %121 = vector.broadcast %120 : vector<1x96xf32> to vector<16x96xf32>
    %122 = arith.addf %118, %121 : vector<16x96xf32>
    %123 = vector.extract_strided_slice %122 {offsets = [0, 0], sizes = [16, 16], strides = [1, 1]} : vector<16x96xf32> to vector<16x16xf32>
    %124 = vector.extract_strided_slice %122 {offsets = [0, 32], sizes = [16, 16], strides = [1, 1]} : vector<16x96xf32> to vector<16x16xf32>
    %125 = vector.extract_strided_slice %122 {offsets = [0, 64], sizes = [16, 16], strides = [1, 1]} : vector<16x96xf32> to vector<16x16xf32>
    %126 = arith.truncf %123 : vector<16x16xf32> to vector<16x16xbf16>
    %127 = arith.truncf %124 : vector<16x16xf32> to vector<16x16xbf16>
    %cst_46 = arith.constant dense<0.000000e+00> : vector<16x16xf32>
    %128 = tpu.matmul %126, %127, %cst_46 {dimension_numbers = #tpu.dot_dimension_numbers<[1], [1], [0], [0], [0, 0, 1, 0], [], []>} : vector<16x16xbf16>, vector<16x16xbf16>, vector<16x16xf32> -> vector<16x16xf32>
    %cst_47 = arith.constant 2.500000e-01 : f32
    %129 = vector.broadcast %cst_47 : f32 to vector<16x16xf32>
    %130 = arith.mulf %128, %129 : vector<16x16xf32>
    %131 = arith.addf %130, %88 : vector<16x16xf32>
    %cst_48 = arith.constant dense<0xFF800000> : vector<16xf32>
    %132 = vector.multi_reduction <maximumf>, %131, %cst_48 [1] : vector<16x16xf32> to vector<16xf32>
    %133 = vector.shape_cast %132 : vector<16xf32> to vector<16x1xf32>
    %134 = vector.broadcast %133 : vector<16x1xf32> to vector<16x16xf32>
    %135 = arith.subf %131, %134 : vector<16x16xf32>
    %136 = math.exp %135 : vector<16x16xf32>
    %cst_49 = arith.constant dense<0.000000e+00> : vector<16xf32>
    %137 = vector.multi_reduction <add>, %136, %cst_49 [1] : vector<16x16xf32> to vector<16xf32>
    %138 = vector.shape_cast %137 : vector<16xf32> to vector<16x1xf32>
    %139 = tpu.reciprocal %138 {approx = true} : vector<16x1xf32> -> vector<16x1xf32>
    %140 = vector.broadcast %139 : vector<16x1xf32> to vector<16x16xf32>
    %141 = arith.mulf %136, %140 : vector<16x16xf32>
    %142 = arith.truncf %141 : vector<16x16xf32> to vector<16x16xbf16>
    %143 = arith.truncf %125 : vector<16x16xf32> to vector<16x16xbf16>
    %cst_50 = arith.constant dense<0.000000e+00> : vector<16x16xf32>
    %144 = tpu.matmul %142, %143, %cst_50 {dimension_numbers = #tpu.dot_dimension_numbers<[1], [0], [0], [1], [0, 0, 1, 1], [], []>} : vector<16x16xbf16>, vector<16x16xbf16>, vector<16x16xf32> -> vector<16x16xf32>
    %145 = vector.extract_strided_slice %122 {offsets = [0, 16], sizes = [16, 16], strides = [1, 1]} : vector<16x96xf32> to vector<16x16xf32>
    %146 = vector.extract_strided_slice %122 {offsets = [0, 48], sizes = [16, 16], strides = [1, 1]} : vector<16x96xf32> to vector<16x16xf32>
    %147 = vector.extract_strided_slice %122 {offsets = [0, 80], sizes = [16, 16], strides = [1, 1]} : vector<16x96xf32> to vector<16x16xf32>
    %148 = arith.truncf %145 : vector<16x16xf32> to vector<16x16xbf16>
    %149 = arith.truncf %146 : vector<16x16xf32> to vector<16x16xbf16>
    %cst_51 = arith.constant dense<0.000000e+00> : vector<16x16xf32>
    %150 = tpu.matmul %148, %149, %cst_51 {dimension_numbers = #tpu.dot_dimension_numbers<[1], [1], [0], [0], [0, 0, 1, 0], [], []>} : vector<16x16xbf16>, vector<16x16xbf16>, vector<16x16xf32> -> vector<16x16xf32>
    %cst_52 = arith.constant 2.500000e-01 : f32
    %151 = vector.broadcast %cst_52 : f32 to vector<16x16xf32>
    %152 = arith.mulf %150, %151 : vector<16x16xf32>
    %153 = arith.addf %152, %88 : vector<16x16xf32>
    %cst_53 = arith.constant dense<0xFF800000> : vector<16xf32>
    %154 = vector.multi_reduction <maximumf>, %153, %cst_53 [1] : vector<16x16xf32> to vector<16xf32>
    %155 = vector.shape_cast %154 : vector<16xf32> to vector<16x1xf32>
    %156 = vector.broadcast %155 : vector<16x1xf32> to vector<16x16xf32>
    %157 = arith.subf %153, %156 : vector<16x16xf32>
    %158 = math.exp %157 : vector<16x16xf32>
    %cst_54 = arith.constant dense<0.000000e+00> : vector<16xf32>
    %159 = vector.multi_reduction <add>, %158, %cst_54 [1] : vector<16x16xf32> to vector<16xf32>
    %160 = vector.shape_cast %159 : vector<16xf32> to vector<16x1xf32>
    %161 = tpu.reciprocal %160 {approx = true} : vector<16x1xf32> -> vector<16x1xf32>
    %162 = vector.broadcast %161 : vector<16x1xf32> to vector<16x16xf32>
    %163 = arith.mulf %158, %162 : vector<16x16xf32>
    %164 = arith.truncf %163 : vector<16x16xf32> to vector<16x16xbf16>
    %165 = arith.truncf %147 : vector<16x16xf32> to vector<16x16xbf16>
    %cst_55 = arith.constant dense<0.000000e+00> : vector<16x16xf32>
    %166 = tpu.matmul %164, %165, %cst_55 {dimension_numbers = #tpu.dot_dimension_numbers<[1], [0], [0], [1], [0, 0, 1, 1], [], []>} : vector<16x16xbf16>, vector<16x16xbf16>, vector<16x16xf32> -> vector<16x16xf32>
    %167 = tpu.concatenate %144, %166 in 1 : vector<16x16xf32>, vector<16x16xf32> -> vector<16x32xf32>
    %168 = arith.truncf %167 : vector<16x32xf32> to vector<16x32xbf16>
    %c0_56 = arith.constant 0 : index
    %c0_57 = arith.constant 0 : index
    %c0_58 = arith.constant 0 : index
    %169 = vector.load %arg10[%c0_56, %c0_57, %c0_58] : memref<2x32x32xbf16, #tpu.memory_space<vmem>>, vector<1x32x32xbf16>
    %170 = vector.shape_cast %169 : vector<1x32x32xbf16> to vector<32x32xbf16>
    %cst_59 = arith.constant dense<0.000000e+00> : vector<16x32xf32>
    %171 = tpu.matmul %168, %170, %cst_59 {dimension_numbers = #tpu.dot_dimension_numbers<[1], [0], [0], [1], [0, 0, 1, 1], [], []>} : vector<16x32xbf16>, vector<32x32xbf16>, vector<16x32xf32> -> vector<16x32xf32>
    %172 = arith.addf %51, %171 : vector<16x32xf32>
    %c0_60 = arith.constant 0 : index
    %c0_61 = arith.constant 0 : index
    %c0_62 = arith.constant 0 : index
    %173 = vector.load %arg11[%c0_60, %c0_61, %c0_62] : memref<2x1x32xf32, #tpu.memory_space<vmem>>, vector<1x1x32xf32>
    %174 = vector.shape_cast %173 : vector<1x1x32xf32> to vector<1x32xf32>
    %175 = vector.broadcast %174 : vector<1x32xf32> to vector<16x32xf32>
    %176 = arith.addf %172, %175 : vector<16x32xf32>
    %c0_63 = arith.constant 0 : index
    %c0_64 = arith.constant 0 : index
    %c0_65 = arith.constant 0 : index
    %177 = vector.load %arg12[%c0_63, %c0_64, %c0_65] : memref<2x1x32xf32, #tpu.memory_space<vmem>>, vector<1x1x32xf32>
    %178 = vector.shape_cast %177 : vector<1x1x32xf32> to vector<1x32xf32>
    %c0_66 = arith.constant 0 : index
    %c0_67 = arith.constant 0 : index
    %c0_68 = arith.constant 0 : index
    %179 = vector.load %arg13[%c0_66, %c0_67, %c0_68] : memref<2x1x32xf32, #tpu.memory_space<vmem>>, vector<1x1x32xf32>
    %180 = vector.shape_cast %179 : vector<1x1x32xf32> to vector<1x32xf32>
    %cst_69 = arith.constant dense<0.000000e+00> : vector<16xf32>
    %181 = vector.multi_reduction <add>, %176, %cst_69 [1] : vector<16x32xf32> to vector<16xf32>
    %182 = vector.shape_cast %181 : vector<16xf32> to vector<16x1xf32>
    %cst_70 = arith.constant 3.200000e+01 : f32
    %183 = vector.broadcast %cst_70 : f32 to vector<16x1xf32>
    %184 = arith.divf %182, %183 : vector<16x1xf32>
    %185 = vector.broadcast %184 : vector<16x1xf32> to vector<16x32xf32>
    %186 = arith.subf %176, %185 : vector<16x32xf32>
    %187 = arith.mulf %186, %186 : vector<16x32xf32>
    %cst_71 = arith.constant dense<0.000000e+00> : vector<16xf32>
    %188 = vector.multi_reduction <add>, %187, %cst_71 [1] : vector<16x32xf32> to vector<16xf32>
    %189 = vector.shape_cast %188 : vector<16xf32> to vector<16x1xf32>
    %cst_72 = arith.constant 3.200000e+01 : f32
    %190 = vector.broadcast %cst_72 : f32 to vector<16x1xf32>
    %191 = arith.divf %189, %190 : vector<16x1xf32>
    %192 = vector.broadcast %184 : vector<16x1xf32> to vector<16x32xf32>
    %193 = arith.subf %176, %192 : vector<16x32xf32>
    %cst_73 = arith.constant 9.99999974E-6 : f32
    %194 = vector.broadcast %cst_73 : f32 to vector<16x1xf32>
    %195 = arith.addf %191, %194 : vector<16x1xf32>
    %196 = math.rsqrt %195 : vector<16x1xf32>
    %197 = vector.broadcast %196 : vector<16x1xf32> to vector<16x32xf32>
    %198 = arith.mulf %193, %197 : vector<16x32xf32>
    %199 = vector.broadcast %178 : vector<1x32xf32> to vector<16x32xf32>
    %200 = arith.mulf %198, %199 : vector<16x32xf32>
    %201 = vector.broadcast %180 : vector<1x32xf32> to vector<16x32xf32>
    %202 = arith.addf %200, %201 : vector<16x32xf32>
    %203 = arith.truncf %202 : vector<16x32xf32> to vector<16x32xbf16>
    %c0_74 = arith.constant 0 : index
    %c0_75 = arith.constant 0 : index
    %c0_76 = arith.constant 0 : index
    %204 = vector.load %arg14[%c0_74, %c0_75, %c0_76] : memref<2x32x128xbf16, #tpu.memory_space<vmem>>, vector<1x32x128xbf16>
    %205 = vector.shape_cast %204 : vector<1x32x128xbf16> to vector<32x128xbf16>
    %cst_77 = arith.constant dense<0.000000e+00> : vector<16x128xf32>
    %206 = tpu.matmul %203, %205, %cst_77 {dimension_numbers = #tpu.dot_dimension_numbers<[1], [0], [0], [1], [0, 0, 1, 1], [], []>} : vector<16x32xbf16>, vector<32x128xbf16>, vector<16x128xf32> -> vector<16x128xf32>
    %c0_78 = arith.constant 0 : index
    %c0_79 = arith.constant 0 : index
    %c0_80 = arith.constant 0 : index
    %207 = vector.load %arg15[%c0_78, %c0_79, %c0_80] : memref<2x1x128xf32, #tpu.memory_space<vmem>>, vector<1x1x128xf32>
    %208 = vector.shape_cast %207 : vector<1x1x128xf32> to vector<1x128xf32>
    %209 = vector.broadcast %208 : vector<1x128xf32> to vector<16x128xf32>
    %210 = arith.addf %206, %209 : vector<16x128xf32>
    %cst_81 = arith.constant 5.000000e-01 : f32
    %211 = vector.broadcast %cst_81 : f32 to vector<16x128xf32>
    %212 = arith.mulf %211, %210 : vector<16x128xf32>
    %213 = arith.mulf %210, %210 : vector<16x128xf32>
    %214 = arith.mulf %210, %213 : vector<16x128xf32>
    %cst_82 = arith.constant 4.471500e-02 : f32
    %215 = vector.broadcast %cst_82 : f32 to vector<16x128xf32>
    %216 = arith.mulf %215, %214 : vector<16x128xf32>
    %217 = arith.addf %210, %216 : vector<16x128xf32>
    %cst_83 = arith.constant 0.797884583 : f32
    %218 = vector.broadcast %cst_83 : f32 to vector<16x128xf32>
    %219 = arith.mulf %218, %217 : vector<16x128xf32>
    %220 = math.tanh %219 : vector<16x128xf32>
    %cst_84 = arith.constant 1.000000e+00 : f32
    %221 = vector.broadcast %cst_84 : f32 to vector<16x128xf32>
    %222 = arith.addf %221, %220 : vector<16x128xf32>
    %223 = arith.mulf %212, %222 : vector<16x128xf32>
    %224 = arith.truncf %223 : vector<16x128xf32> to vector<16x128xbf16>
    %c0_85 = arith.constant 0 : index
    %c0_86 = arith.constant 0 : index
    %c0_87 = arith.constant 0 : index
    %225 = vector.load %arg16[%c0_85, %c0_86, %c0_87] : memref<2x128x32xbf16, #tpu.memory_space<vmem>>, vector<1x128x32xbf16>
    %226 = vector.shape_cast %225 : vector<1x128x32xbf16> to vector<128x32xbf16>
    %cst_88 = arith.constant dense<0.000000e+00> : vector<16x32xf32>
    %227 = tpu.matmul %224, %226, %cst_88 {dimension_numbers = #tpu.dot_dimension_numbers<[1], [0], [0], [1], [0, 0, 1, 1], [], []>} : vector<16x128xbf16>, vector<128x32xbf16>, vector<16x32xf32> -> vector<16x32xf32>
    %228 = arith.addf %176, %227 : vector<16x32xf32>
    %c0_89 = arith.constant 0 : index
    %c0_90 = arith.constant 0 : index
    %c0_91 = arith.constant 0 : index
    %229 = vector.load %arg17[%c0_89, %c0_90, %c0_91] : memref<2x1x32xf32, #tpu.memory_space<vmem>>, vector<1x1x32xf32>
    %230 = vector.shape_cast %229 : vector<1x1x32xf32> to vector<1x32xf32>
    %231 = vector.broadcast %230 : vector<1x32xf32> to vector<16x32xf32>
    %232 = arith.addf %228, %231 : vector<16x32xf32>
    %c1_92 = arith.constant 1 : index
    %c0_93 = arith.constant 0 : index
    %c0_94 = arith.constant 0 : index
    %233 = vector.load %arg6[%c1_92, %c0_93, %c0_94] : memref<2x1x32xf32, #tpu.memory_space<vmem>>, vector<1x1x32xf32>
    %234 = vector.shape_cast %233 : vector<1x1x32xf32> to vector<1x32xf32>
    %c1_95 = arith.constant 1 : index
    %c0_96 = arith.constant 0 : index
    %c0_97 = arith.constant 0 : index
    %235 = vector.load %arg7[%c1_95, %c0_96, %c0_97] : memref<2x1x32xf32, #tpu.memory_space<vmem>>, vector<1x1x32xf32>
    %236 = vector.shape_cast %235 : vector<1x1x32xf32> to vector<1x32xf32>
    %cst_98 = arith.constant dense<0.000000e+00> : vector<16xf32>
    %237 = vector.multi_reduction <add>, %232, %cst_98 [1] : vector<16x32xf32> to vector<16xf32>
    %238 = vector.shape_cast %237 : vector<16xf32> to vector<16x1xf32>
    %cst_99 = arith.constant 3.200000e+01 : f32
    %239 = vector.broadcast %cst_99 : f32 to vector<16x1xf32>
    %240 = arith.divf %238, %239 : vector<16x1xf32>
    %241 = vector.broadcast %240 : vector<16x1xf32> to vector<16x32xf32>
    %242 = arith.subf %232, %241 : vector<16x32xf32>
    %243 = arith.mulf %242, %242 : vector<16x32xf32>
    %cst_100 = arith.constant dense<0.000000e+00> : vector<16xf32>
    %244 = vector.multi_reduction <add>, %243, %cst_100 [1] : vector<16x32xf32> to vector<16xf32>
    %245 = vector.shape_cast %244 : vector<16xf32> to vector<16x1xf32>
    %cst_101 = arith.constant 3.200000e+01 : f32
    %246 = vector.broadcast %cst_101 : f32 to vector<16x1xf32>
    %247 = arith.divf %245, %246 : vector<16x1xf32>
    %248 = vector.broadcast %240 : vector<16x1xf32> to vector<16x32xf32>
    %249 = arith.subf %232, %248 : vector<16x32xf32>
    %cst_102 = arith.constant 9.99999974E-6 : f32
    %250 = vector.broadcast %cst_102 : f32 to vector<16x1xf32>
    %251 = arith.addf %247, %250 : vector<16x1xf32>
    %252 = math.rsqrt %251 : vector<16x1xf32>
    %253 = vector.broadcast %252 : vector<16x1xf32> to vector<16x32xf32>
    %254 = arith.mulf %249, %253 : vector<16x32xf32>
    %255 = vector.broadcast %234 : vector<1x32xf32> to vector<16x32xf32>
    %256 = arith.mulf %254, %255 : vector<16x32xf32>
    %257 = vector.broadcast %236 : vector<1x32xf32> to vector<16x32xf32>
    %258 = arith.addf %256, %257 : vector<16x32xf32>
    %259 = arith.truncf %258 : vector<16x32xf32> to vector<16x32xbf16>
    %c1_103 = arith.constant 1 : index
    %c0_104 = arith.constant 0 : index
    %c0_105 = arith.constant 0 : index
    %260 = vector.load %arg8[%c1_103, %c0_104, %c0_105] : memref<2x32x96xbf16, #tpu.memory_space<vmem>>, vector<1x32x96xbf16>
    %261 = vector.shape_cast %260 : vector<1x32x96xbf16> to vector<32x96xbf16>
    %cst_106 = arith.constant dense<0.000000e+00> : vector<16x96xf32>
    %262 = tpu.matmul %259, %261, %cst_106 {dimension_numbers = #tpu.dot_dimension_numbers<[1], [0], [0], [1], [0, 0, 1, 1], [], []>} : vector<16x32xbf16>, vector<32x96xbf16>, vector<16x96xf32> -> vector<16x96xf32>
    %c1_107 = arith.constant 1 : index
    %c0_108 = arith.constant 0 : index
    %c0_109 = arith.constant 0 : index
    %263 = vector.load %arg9[%c1_107, %c0_108, %c0_109] : memref<2x1x96xf32, #tpu.memory_space<vmem>>, vector<1x1x96xf32>
    %264 = vector.shape_cast %263 : vector<1x1x96xf32> to vector<1x96xf32>
    %265 = vector.broadcast %264 : vector<1x96xf32> to vector<16x96xf32>
    %266 = arith.addf %262, %265 : vector<16x96xf32>
    %267 = vector.extract_strided_slice %266 {offsets = [0, 0], sizes = [16, 16], strides = [1, 1]} : vector<16x96xf32> to vector<16x16xf32>
    %268 = vector.extract_strided_slice %266 {offsets = [0, 32], sizes = [16, 16], strides = [1, 1]} : vector<16x96xf32> to vector<16x16xf32>
    %269 = vector.extract_strided_slice %266 {offsets = [0, 64], sizes = [16, 16], strides = [1, 1]} : vector<16x96xf32> to vector<16x16xf32>
    %270 = arith.truncf %267 : vector<16x16xf32> to vector<16x16xbf16>
    %271 = arith.truncf %268 : vector<16x16xf32> to vector<16x16xbf16>
    %cst_110 = arith.constant dense<0.000000e+00> : vector<16x16xf32>
    %272 = tpu.matmul %270, %271, %cst_110 {dimension_numbers = #tpu.dot_dimension_numbers<[1], [1], [0], [0], [0, 0, 1, 0], [], []>} : vector<16x16xbf16>, vector<16x16xbf16>, vector<16x16xf32> -> vector<16x16xf32>
    %cst_111 = arith.constant 2.500000e-01 : f32
    %273 = vector.broadcast %cst_111 : f32 to vector<16x16xf32>
    %274 = arith.mulf %272, %273 : vector<16x16xf32>
    %275 = arith.addf %274, %88 : vector<16x16xf32>
    %cst_112 = arith.constant dense<0xFF800000> : vector<16xf32>
    %276 = vector.multi_reduction <maximumf>, %275, %cst_112 [1] : vector<16x16xf32> to vector<16xf32>
    %277 = vector.shape_cast %276 : vector<16xf32> to vector<16x1xf32>
    %278 = vector.broadcast %277 : vector<16x1xf32> to vector<16x16xf32>
    %279 = arith.subf %275, %278 : vector<16x16xf32>
    %280 = math.exp %279 : vector<16x16xf32>
    %cst_113 = arith.constant dense<0.000000e+00> : vector<16xf32>
    %281 = vector.multi_reduction <add>, %280, %cst_113 [1] : vector<16x16xf32> to vector<16xf32>
    %282 = vector.shape_cast %281 : vector<16xf32> to vector<16x1xf32>
    %283 = tpu.reciprocal %282 {approx = true} : vector<16x1xf32> -> vector<16x1xf32>
    %284 = vector.broadcast %283 : vector<16x1xf32> to vector<16x16xf32>
    %285 = arith.mulf %280, %284 : vector<16x16xf32>
    %286 = arith.truncf %285 : vector<16x16xf32> to vector<16x16xbf16>
    %287 = arith.truncf %269 : vector<16x16xf32> to vector<16x16xbf16>
    %cst_114 = arith.constant dense<0.000000e+00> : vector<16x16xf32>
    %288 = tpu.matmul %286, %287, %cst_114 {dimension_numbers = #tpu.dot_dimension_numbers<[1], [0], [0], [1], [0, 0, 1, 1], [], []>} : vector<16x16xbf16>, vector<16x16xbf16>, vector<16x16xf32> -> vector<16x16xf32>
    %289 = vector.extract_strided_slice %266 {offsets = [0, 16], sizes = [16, 16], strides = [1, 1]} : vector<16x96xf32> to vector<16x16xf32>
    %290 = vector.extract_strided_slice %266 {offsets = [0, 48], sizes = [16, 16], strides = [1, 1]} : vector<16x96xf32> to vector<16x16xf32>
    %291 = vector.extract_strided_slice %266 {offsets = [0, 80], sizes = [16, 16], strides = [1, 1]} : vector<16x96xf32> to vector<16x16xf32>
    %292 = arith.truncf %289 : vector<16x16xf32> to vector<16x16xbf16>
    %293 = arith.truncf %290 : vector<16x16xf32> to vector<16x16xbf16>
    %cst_115 = arith.constant dense<0.000000e+00> : vector<16x16xf32>
    %294 = tpu.matmul %292, %293, %cst_115 {dimension_numbers = #tpu.dot_dimension_numbers<[1], [1], [0], [0], [0, 0, 1, 0], [], []>} : vector<16x16xbf16>, vector<16x16xbf16>, vector<16x16xf32> -> vector<16x16xf32>
    %cst_116 = arith.constant 2.500000e-01 : f32
    %295 = vector.broadcast %cst_116 : f32 to vector<16x16xf32>
    %296 = arith.mulf %294, %295 : vector<16x16xf32>
    %297 = arith.addf %296, %88 : vector<16x16xf32>
    %cst_117 = arith.constant dense<0xFF800000> : vector<16xf32>
    %298 = vector.multi_reduction <maximumf>, %297, %cst_117 [1] : vector<16x16xf32> to vector<16xf32>
    %299 = vector.shape_cast %298 : vector<16xf32> to vector<16x1xf32>
    %300 = vector.broadcast %299 : vector<16x1xf32> to vector<16x16xf32>
    %301 = arith.subf %297, %300 : vector<16x16xf32>
    %302 = math.exp %301 : vector<16x16xf32>
    %cst_118 = arith.constant dense<0.000000e+00> : vector<16xf32>
    %303 = vector.multi_reduction <add>, %302, %cst_118 [1] : vector<16x16xf32> to vector<16xf32>
    %304 = vector.shape_cast %303 : vector<16xf32> to vector<16x1xf32>
    %305 = tpu.reciprocal %304 {approx = true} : vector<16x1xf32> -> vector<16x1xf32>
    %306 = vector.broadcast %305 : vector<16x1xf32> to vector<16x16xf32>
    %307 = arith.mulf %302, %306 : vector<16x16xf32>
    %308 = arith.truncf %307 : vector<16x16xf32> to vector<16x16xbf16>
    %309 = arith.truncf %291 : vector<16x16xf32> to vector<16x16xbf16>
    %cst_119 = arith.constant dense<0.000000e+00> : vector<16x16xf32>
    %310 = tpu.matmul %308, %309, %cst_119 {dimension_numbers = #tpu.dot_dimension_numbers<[1], [0], [0], [1], [0, 0, 1, 1], [], []>} : vector<16x16xbf16>, vector<16x16xbf16>, vector<16x16xf32> -> vector<16x16xf32>
    %311 = tpu.concatenate %288, %310 in 1 : vector<16x16xf32>, vector<16x16xf32> -> vector<16x32xf32>
    %312 = arith.truncf %311 : vector<16x32xf32> to vector<16x32xbf16>
    %c1_120 = arith.constant 1 : index
    %c0_121 = arith.constant 0 : index
    %c0_122 = arith.constant 0 : index
    %313 = vector.load %arg10[%c1_120, %c0_121, %c0_122] : memref<2x32x32xbf16, #tpu.memory_space<vmem>>, vector<1x32x32xbf16>
    %314 = vector.shape_cast %313 : vector<1x32x32xbf16> to vector<32x32xbf16>
    %cst_123 = arith.constant dense<0.000000e+00> : vector<16x32xf32>
    %315 = tpu.matmul %312, %314, %cst_123 {dimension_numbers = #tpu.dot_dimension_numbers<[1], [0], [0], [1], [0, 0, 1, 1], [], []>} : vector<16x32xbf16>, vector<32x32xbf16>, vector<16x32xf32> -> vector<16x32xf32>
    %316 = arith.addf %232, %315 : vector<16x32xf32>
    %c1_124 = arith.constant 1 : index
    %c0_125 = arith.constant 0 : index
    %c0_126 = arith.constant 0 : index
    %317 = vector.load %arg11[%c1_124, %c0_125, %c0_126] : memref<2x1x32xf32, #tpu.memory_space<vmem>>, vector<1x1x32xf32>
    %318 = vector.shape_cast %317 : vector<1x1x32xf32> to vector<1x32xf32>
    %319 = vector.broadcast %318 : vector<1x32xf32> to vector<16x32xf32>
    %320 = arith.addf %316, %319 : vector<16x32xf32>
    %c1_127 = arith.constant 1 : index
    %c0_128 = arith.constant 0 : index
    %c0_129 = arith.constant 0 : index
    %321 = vector.load %arg12[%c1_127, %c0_128, %c0_129] : memref<2x1x32xf32, #tpu.memory_space<vmem>>, vector<1x1x32xf32>
    %322 = vector.shape_cast %321 : vector<1x1x32xf32> to vector<1x32xf32>
    %c1_130 = arith.constant 1 : index
    %c0_131 = arith.constant 0 : index
    %c0_132 = arith.constant 0 : index
    %323 = vector.load %arg13[%c1_130, %c0_131, %c0_132] : memref<2x1x32xf32, #tpu.memory_space<vmem>>, vector<1x1x32xf32>
    %324 = vector.shape_cast %323 : vector<1x1x32xf32> to vector<1x32xf32>
    %cst_133 = arith.constant dense<0.000000e+00> : vector<16xf32>
    %325 = vector.multi_reduction <add>, %320, %cst_133 [1] : vector<16x32xf32> to vector<16xf32>
    %326 = vector.shape_cast %325 : vector<16xf32> to vector<16x1xf32>
    %cst_134 = arith.constant 3.200000e+01 : f32
    %327 = vector.broadcast %cst_134 : f32 to vector<16x1xf32>
    %328 = arith.divf %326, %327 : vector<16x1xf32>
    %329 = vector.broadcast %328 : vector<16x1xf32> to vector<16x32xf32>
    %330 = arith.subf %320, %329 : vector<16x32xf32>
    %331 = arith.mulf %330, %330 : vector<16x32xf32>
    %cst_135 = arith.constant dense<0.000000e+00> : vector<16xf32>
    %332 = vector.multi_reduction <add>, %331, %cst_135 [1] : vector<16x32xf32> to vector<16xf32>
    %333 = vector.shape_cast %332 : vector<16xf32> to vector<16x1xf32>
    %cst_136 = arith.constant 3.200000e+01 : f32
    %334 = vector.broadcast %cst_136 : f32 to vector<16x1xf32>
    %335 = arith.divf %333, %334 : vector<16x1xf32>
    %336 = vector.broadcast %328 : vector<16x1xf32> to vector<16x32xf32>
    %337 = arith.subf %320, %336 : vector<16x32xf32>
    %cst_137 = arith.constant 9.99999974E-6 : f32
    %338 = vector.broadcast %cst_137 : f32 to vector<16x1xf32>
    %339 = arith.addf %335, %338 : vector<16x1xf32>
    %340 = math.rsqrt %339 : vector<16x1xf32>
    %341 = vector.broadcast %340 : vector<16x1xf32> to vector<16x32xf32>
    %342 = arith.mulf %337, %341 : vector<16x32xf32>
    %343 = vector.broadcast %322 : vector<1x32xf32> to vector<16x32xf32>
    %344 = arith.mulf %342, %343 : vector<16x32xf32>
    %345 = vector.broadcast %324 : vector<1x32xf32> to vector<16x32xf32>
    %346 = arith.addf %344, %345 : vector<16x32xf32>
    %347 = arith.truncf %346 : vector<16x32xf32> to vector<16x32xbf16>
    %c1_138 = arith.constant 1 : index
    %c0_139 = arith.constant 0 : index
    %c0_140 = arith.constant 0 : index
    %348 = vector.load %arg14[%c1_138, %c0_139, %c0_140] : memref<2x32x128xbf16, #tpu.memory_space<vmem>>, vector<1x32x128xbf16>
    %349 = vector.shape_cast %348 : vector<1x32x128xbf16> to vector<32x128xbf16>
    %cst_141 = arith.constant dense<0.000000e+00> : vector<16x128xf32>
    %350 = tpu.matmul %347, %349, %cst_141 {dimension_numbers = #tpu.dot_dimension_numbers<[1], [0], [0], [1], [0, 0, 1, 1], [], []>} : vector<16x32xbf16>, vector<32x128xbf16>, vector<16x128xf32> -> vector<16x128xf32>
    %c1_142 = arith.constant 1 : index
    %c0_143 = arith.constant 0 : index
    %c0_144 = arith.constant 0 : index
    %351 = vector.load %arg15[%c1_142, %c0_143, %c0_144] : memref<2x1x128xf32, #tpu.memory_space<vmem>>, vector<1x1x128xf32>
    %352 = vector.shape_cast %351 : vector<1x1x128xf32> to vector<1x128xf32>
    %353 = vector.broadcast %352 : vector<1x128xf32> to vector<16x128xf32>
    %354 = arith.addf %350, %353 : vector<16x128xf32>
    %cst_145 = arith.constant 5.000000e-01 : f32
    %355 = vector.broadcast %cst_145 : f32 to vector<16x128xf32>
    %356 = arith.mulf %355, %354 : vector<16x128xf32>
    %357 = arith.mulf %354, %354 : vector<16x128xf32>
    %358 = arith.mulf %354, %357 : vector<16x128xf32>
    %cst_146 = arith.constant 4.471500e-02 : f32
    %359 = vector.broadcast %cst_146 : f32 to vector<16x128xf32>
    %360 = arith.mulf %359, %358 : vector<16x128xf32>
    %361 = arith.addf %354, %360 : vector<16x128xf32>
    %cst_147 = arith.constant 0.797884583 : f32
    %362 = vector.broadcast %cst_147 : f32 to vector<16x128xf32>
    %363 = arith.mulf %362, %361 : vector<16x128xf32>
    %364 = math.tanh %363 : vector<16x128xf32>
    %cst_148 = arith.constant 1.000000e+00 : f32
    %365 = vector.broadcast %cst_148 : f32 to vector<16x128xf32>
    %366 = arith.addf %365, %364 : vector<16x128xf32>
    %367 = arith.mulf %356, %366 : vector<16x128xf32>
    %368 = arith.truncf %367 : vector<16x128xf32> to vector<16x128xbf16>
    %c1_149 = arith.constant 1 : index
    %c0_150 = arith.constant 0 : index
    %c0_151 = arith.constant 0 : index
    %369 = vector.load %arg16[%c1_149, %c0_150, %c0_151] : memref<2x128x32xbf16, #tpu.memory_space<vmem>>, vector<1x128x32xbf16>
    %370 = vector.shape_cast %369 : vector<1x128x32xbf16> to vector<128x32xbf16>
    %cst_152 = arith.constant dense<0.000000e+00> : vector<16x32xf32>
    %371 = tpu.matmul %368, %370, %cst_152 {dimension_numbers = #tpu.dot_dimension_numbers<[1], [0], [0], [1], [0, 0, 1, 1], [], []>} : vector<16x128xbf16>, vector<128x32xbf16>, vector<16x32xf32> -> vector<16x32xf32>
    %372 = arith.addf %320, %371 : vector<16x32xf32>
    %c1_153 = arith.constant 1 : index
    %c0_154 = arith.constant 0 : index
    %c0_155 = arith.constant 0 : index
    %373 = vector.load %arg17[%c1_153, %c0_154, %c0_155] : memref<2x1x32xf32, #tpu.memory_space<vmem>>, vector<1x1x32xf32>
    %374 = vector.shape_cast %373 : vector<1x1x32xf32> to vector<1x32xf32>
    %375 = vector.broadcast %374 : vector<1x32xf32> to vector<16x32xf32>
    %376 = arith.addf %372, %375 : vector<16x32xf32>
    %c0_156 = arith.constant 0 : index
    %c0_157 = arith.constant 0 : index
    %377 = vector.load %arg18[%c0_156, %c0_157] : memref<1x32xf32, #tpu.memory_space<vmem>>, vector<1x32xf32>
    %c0_158 = arith.constant 0 : index
    %c0_159 = arith.constant 0 : index
    %378 = vector.load %arg19[%c0_158, %c0_159] : memref<1x32xf32, #tpu.memory_space<vmem>>, vector<1x32xf32>
    %cst_160 = arith.constant dense<0.000000e+00> : vector<16xf32>
    %379 = vector.multi_reduction <add>, %376, %cst_160 [1] : vector<16x32xf32> to vector<16xf32>
    %380 = vector.shape_cast %379 : vector<16xf32> to vector<16x1xf32>
    %cst_161 = arith.constant 3.200000e+01 : f32
    %381 = vector.broadcast %cst_161 : f32 to vector<16x1xf32>
    %382 = arith.divf %380, %381 : vector<16x1xf32>
    %383 = vector.broadcast %382 : vector<16x1xf32> to vector<16x32xf32>
    %384 = arith.subf %376, %383 : vector<16x32xf32>
    %385 = arith.mulf %384, %384 : vector<16x32xf32>
    %cst_162 = arith.constant dense<0.000000e+00> : vector<16xf32>
    %386 = vector.multi_reduction <add>, %385, %cst_162 [1] : vector<16x32xf32> to vector<16xf32>
    %387 = vector.shape_cast %386 : vector<16xf32> to vector<16x1xf32>
    %cst_163 = arith.constant 3.200000e+01 : f32
    %388 = vector.broadcast %cst_163 : f32 to vector<16x1xf32>
    %389 = arith.divf %387, %388 : vector<16x1xf32>
    %390 = vector.broadcast %382 : vector<16x1xf32> to vector<16x32xf32>
    %391 = arith.subf %376, %390 : vector<16x32xf32>
    %cst_164 = arith.constant 9.99999974E-6 : f32
    %392 = vector.broadcast %cst_164 : f32 to vector<16x1xf32>
    %393 = arith.addf %389, %392 : vector<16x1xf32>
    %394 = math.rsqrt %393 : vector<16x1xf32>
    %395 = vector.broadcast %394 : vector<16x1xf32> to vector<16x32xf32>
    %396 = arith.mulf %391, %395 : vector<16x32xf32>
    %397 = vector.broadcast %377 : vector<1x32xf32> to vector<16x32xf32>
    %398 = arith.mulf %396, %397 : vector<16x32xf32>
    %399 = vector.broadcast %378 : vector<1x32xf32> to vector<16x32xf32>
    %400 = arith.addf %398, %399 : vector<16x32xf32>
    %401 = arith.truncf %400 : vector<16x32xf32> to vector<16x32xbf16>
    %c0_165 = arith.constant 0 : index
    %c0_166 = arith.constant 0 : index
    %402 = vector.load %arg4[%c0_165, %c0_166] : memref<512x32xf32, #tpu.memory_space<vmem>>, vector<512x32xf32>
    %403 = arith.truncf %402 : vector<512x32xf32> to vector<512x32xbf16>
    %cst_167 = arith.constant dense<0.000000e+00> : vector<16x512xf32>
    %404 = tpu.matmul %401, %403, %cst_167 {dimension_numbers = #tpu.dot_dimension_numbers<[1], [1], [0], [0], [0, 0, 1, 0], [], []>} : vector<16x32xbf16>, vector<512x32xbf16>, vector<16x512xf32> -> vector<16x512xf32>
    %c0_168 = arith.constant 0 : index
    %c0_169 = arith.constant 0 : index
    %405 = vector.load %arg20[%c0_168, %c0_169] : memref<16x512xf32, #tpu.memory_space<vmem>>, vector<16x512xf32>
    tpu.vector_store %arg20[%c0_168, %c0_169], %404 {strides = array<i32>} : memref<16x512xf32, #tpu.memory_space<vmem>>, vector<16x512xf32>,
    %c0_170 = arith.constant 0 : index
    %c0_171 = arith.constant 0 : index
    %406 = vector.load %arg2[%c0_170, %c0_171] : memref<16x1xi32, #tpu.memory_space<vmem>>, vector<16x1xi32>
    %c0_i32_172 = arith.constant 0 : i32
    %407 = vector.broadcast %c0_i32_172 : i32 to vector<16x1xi32>
    %408 = arith.cmpi sge, %406, %407 : vector<16x1xi32>
    %409 = arith.extui %408 : vector<16x1xi1> to vector<16x1xi32>
    %410 = arith.sitofp %409 : vector<16x1xi32> to vector<16x1xf32>
    %c0_i32_173 = arith.constant 0 : i32
    %411 = vector.broadcast %c0_i32_173 : i32 to vector<16x1xi32>
    %412 = arith.maxsi %406, %411 : vector<16x1xi32>
    %413 = tpu.iota {dimensions = array<i32: 1>} : vector<16x512xi32>
    %414 = vector.broadcast %412 : vector<16x1xi32> to vector<16x512xi32>
    %415 = arith.cmpi eq, %413, %414 : vector<16x512xi32>
    %416 = arith.extui %415 : vector<16x512xi1> to vector<16x512xi32>
    %417 = arith.sitofp %416 : vector<16x512xi32> to vector<16x512xf32>
    %418 = arith.mulf %404, %417 : vector<16x512xf32>
    %cst_174 = arith.constant dense<0.000000e+00> : vector<16xf32>
    %419 = vector.multi_reduction <add>, %418, %cst_174 [1] : vector<16x512xf32> to vector<16xf32>
    %420 = vector.shape_cast %419 : vector<16xf32> to vector<16x1xf32>
    %cst_175 = arith.constant dense<0xFF800000> : vector<16xf32>
    %421 = vector.multi_reduction <maximumf>, %404, %cst_175 [1] : vector<16x512xf32> to vector<16xf32>
    %422 = vector.shape_cast %421 : vector<16xf32> to vector<16x1xf32>
    %423 = vector.broadcast %422 : vector<16x1xf32> to vector<16x512xf32>
    %424 = arith.subf %404, %423 : vector<16x512xf32>
    %425 = math.exp %424 : vector<16x512xf32>
    %cst_176 = arith.constant dense<0.000000e+00> : vector<16xf32>
    %426 = vector.multi_reduction <add>, %425, %cst_176 [1] : vector<16x512xf32> to vector<16xf32>
    %427 = vector.shape_cast %426 : vector<16xf32> to vector<16x1xf32>
    %428 = math.log %427 : vector<16x1xf32>
    %429 = arith.addf %428, %422 : vector<16x1xf32>
    %430 = arith.subf %429, %420 : vector<16x1xf32>
    %431 = arith.mulf %410, %430 : vector<16x1xf32>
    %432 = vector.shape_cast %431 : vector<16x1xf32> to vector<1x16x1xf32>
    %cst_177 = arith.constant dense<0.000000e+00> : vector<1xf32>
    %433 = vector.multi_reduction <add>, %432, %cst_177 [1, 2] : vector<1x16x1xf32> to vector<1xf32>
    %434 = vector.shape_cast %433 : vector<1xf32> to vector<1x1x1xf32>
    %435 = vector.extract %434[0, 0, 0] : f32 from vector<1x1x1xf32>
    %436 = vector.broadcast %435 : f32 to vector<1x1xf32>
    %437 = vector.shape_cast %410 : vector<16x1xf32> to vector<1x16x1xf32>
    %cst_178 = arith.constant dense<0.000000e+00> : vector<1xf32>
    %438 = vector.multi_reduction <add>, %437, %cst_178 [1, 2] : vector<1x16x1xf32> to vector<1xf32>
    %439 = vector.shape_cast %438 : vector<1xf32> to vector<1x1x1xf32>
    %440 = vector.extract %439[0, 0, 0] : f32 from vector<1x1x1xf32>
    %441 = vector.broadcast %440 : f32 to vector<1x1xf32>
    %442 = tpu.iota {dimensions = array<i32: 1>} : vector<1x128xi32>
    %c0_i32_179 = arith.constant 0 : i32
    %443 = vector.broadcast %c0_i32_179 : i32 to vector<1x128xi32>
    %444 = arith.cmpi eq, %442, %443 : vector<1x128xi32>
    %cst_180 = arith.constant 0.000000e+00 : f32
    %445 = vector.shape_cast %436 : vector<1x1xf32> to vector<1x1xf32>
    %446 = vector.broadcast %445 : vector<1x1xf32> to vector<1x128xf32>
    %447 = vector.broadcast %cst_180 : f32 to vector<1x128xf32>
    %448 = arith.select %444, %446, %447 : vector<1x128xi1>, vector<1x128xf32>
    %c1_i32 = arith.constant 1 : i32
    %449 = vector.broadcast %c1_i32 : i32 to vector<1x128xi32>
    %450 = arith.cmpi eq, %442, %449 : vector<1x128xi32>
    %cst_181 = arith.constant 0.000000e+00 : f32
    %451 = vector.shape_cast %441 : vector<1x1xf32> to vector<1x1xf32>
    %452 = vector.broadcast %451 : vector<1x1xf32> to vector<1x128xf32>
    %453 = vector.broadcast %cst_181 : f32 to vector<1x128xf32>
    %454 = arith.select %450, %452, %453 : vector<1x128xi1>, vector<1x128xf32>
    %455 = arith.addf %448, %454 : vector<1x128xf32>
    %c0_182 = arith.constant 0 : index
    %c0_183 = arith.constant 0 : index
    %456 = vector.load %arg21[%c0_182, %c0_183] : memref<1x128xf32, #tpu.memory_space<vmem>>, vector<1x128xf32>
    tpu.vector_store %arg21[%c0_182, %c0_183], %455 {strides = array<i32>} : memref<1x128xf32, #tpu.memory_space<vmem>>, vector<1x128xf32>,
    return
  }
  func.func @transform_0(%arg0: i32, %arg1: memref<16xi32, #tpu.memory_space<smem>>) -> (i32, i32) {
    %c0_i32 = arith.constant 0 : i32
    %c0_i32_0 = arith.constant 0 : i32
    %c0_i32_1 = arith.constant 0 : i32
    return %c0_i32, %c0_i32_0 : i32, i32
  }
  func.func @transform_1(%arg0: i32, %arg1: memref<16xi32, #tpu.memory_space<smem>>) -> (i32, i32) {
    %c0_i32 = arith.constant 0 : i32
    %c0_i32_0 = arith.constant 0 : i32
    %c0_i32_1 = arith.constant 0 : i32
    return %c0_i32, %c0_i32_0 : i32, i32
  }
  func.func @transform_2(%arg0: i32, %arg1: memref<16xi32, #tpu.memory_space<smem>>) -> (i32, i32) {
    %c0_i32 = arith.constant 0 : i32
    %c0_i32_0 = arith.constant 0 : i32
    %c0_i32_1 = arith.constant 0 : i32
    return %c0_i32, %c0_i32_0 : i32, i32
  }
  func.func @transform_3(%arg0: i32, %arg1: memref<16xi32, #tpu.memory_space<smem>>) -> (i32, i32) {
    %c0_i32 = arith.constant 0 : i32
    %c0_i32_0 = arith.constant 0 : i32
    %c0_i32_1 = arith.constant 0 : i32
    return %c0_i32, %c0_i32_0 : i32, i32
  }
  func.func @transform_4(%arg0: i32, %arg1: memref<16xi32, #tpu.memory_space<smem>>) -> (i32, i32, i32) {
    %c0_i32 = arith.constant 0 : i32
    %c0_i32_0 = arith.constant 0 : i32
    %c0_i32_1 = arith.constant 0 : i32
    %c0_i32_2 = arith.constant 0 : i32
    return %c0_i32, %c0_i32_0, %c0_i32_1 : i32, i32, i32
  }
  func.func @transform_5(%arg0: i32, %arg1: memref<16xi32, #tpu.memory_space<smem>>) -> (i32, i32, i32) {
    %c0_i32 = arith.constant 0 : i32
    %c0_i32_0 = arith.constant 0 : i32
    %c0_i32_1 = arith.constant 0 : i32
    %c0_i32_2 = arith.constant 0 : i32
    return %c0_i32, %c0_i32_0, %c0_i32_1 : i32, i32, i32
  }
  func.func @transform_6(%arg0: i32, %arg1: memref<16xi32, #tpu.memory_space<smem>>) -> (i32, i32, i32) {
    %c0_i32 = arith.constant 0 : i32
    %c0_i32_0 = arith.constant 0 : i32
    %c0_i32_1 = arith.constant 0 : i32
    %c0_i32_2 = arith.constant 0 : i32
    return %c0_i32, %c0_i32_0, %c0_i32_1 : i32, i32, i32
  }
  func.func @transform_7(%arg0: i32, %arg1: memref<16xi32, #tpu.memory_space<smem>>) -> (i32, i32, i32) {
    %c0_i32 = arith.constant 0 : i32
    %c0_i32_0 = arith.constant 0 : i32
    %c0_i32_1 = arith.constant 0 : i32
    %c0_i32_2 = arith.constant 0 : i32
    return %c0_i32, %c0_i32_0, %c0_i32_1 : i32, i32, i32
  }
  func.func @transform_8(%arg0: i32, %arg1: memref<16xi32, #tpu.memory_space<smem>>) -> (i32, i32, i32) {
    %c0_i32 = arith.constant 0 : i32
    %c0_i32_0 = arith.constant 0 : i32
    %c0_i32_1 = arith.constant 0 : i32
    %c0_i32_2 = arith.constant 0 : i32
    return %c0_i32, %c0_i32_0, %c0_i32_1 : i32, i32, i32
  }
  func.func @transform_9(%arg0: i32, %arg1: memref<16xi32, #tpu.memory_space<smem>>) -> (i32, i32, i32) {
    %c0_i32 = arith.constant 0 : i32
    %c0_i32_0 = arith.constant 0 : i32
    %c0_i32_1 = arith.constant 0 : i32
    %c0_i32_2 = arith.constant 0 : i32
    return %c0_i32, %c0_i32_0, %c0_i32_1 : i32, i32, i32
  }
  func.func @transform_10(%arg0: i32, %arg1: memref<16xi32, #tpu.memory_space<smem>>) -> (i32, i32, i32) {
    %c0_i32 = arith.constant 0 : i32
    %c0_i32_0 = arith.constant 0 : i32
    %c0_i32_1 = arith.constant 0 : i32
    %c0_i32_2 = arith.constant 0 : i32
    return %c0_i32, %c0_i32_0, %c0_i32_1 : i32, i32, i32
  }
  func.func @transform_11(%arg0: i32, %arg1: memref<16xi32, #tpu.memory_space<smem>>) -> (i32, i32, i32) {
    %c0_i32 = arith.constant 0 : i32
    %c0_i32_0 = arith.constant 0 : i32
    %c0_i32_1 = arith.constant 0 : i32
    %c0_i32_2 = arith.constant 0 : i32
    return %c0_i32, %c0_i32_0, %c0_i32_1 : i32, i32, i32
  }
  func.func @transform_12(%arg0: i32, %arg1: memref<16xi32, #tpu.memory_space<smem>>) -> (i32, i32, i32) {
    %c0_i32 = arith.constant 0 : i32
    %c0_i32_0 = arith.constant 0 : i32
    %c0_i32_1 = arith.constant 0 : i32
    %c0_i32_2 = arith.constant 0 : i32
    return %c0_i32, %c0_i32_0, %c0_i32_1 : i32, i32, i32
  }
  func.func @transform_13(%arg0: i32, %arg1: memref<16xi32, #tpu.memory_space<smem>>) -> (i32, i32, i32) {
    %c0_i32 = arith.constant 0 : i32
    %c0_i32_0 = arith.constant 0 : i32
    %c0_i32_1 = arith.constant 0 : i32
    %c0_i32_2 = arith.constant 0 : i32
    return %c0_i32, %c0_i32_0, %c0_i32_1 : i32, i32, i32
  }
  func.func @transform_14(%arg0: i32, %arg1: memref<16xi32, #tpu.memory_space<smem>>) -> (i32, i32, i32) {
    %c0_i32 = arith.constant 0 : i32
    %c0_i32_0 = arith.constant 0 : i32
    %c0_i32_1 = arith.constant 0 : i32
    %c0_i32_2 = arith.constant 0 : i32
    return %c0_i32, %c0_i32_0, %c0_i32_1 : i32, i32, i32
  }
  func.func @transform_15(%arg0: i32, %arg1: memref<16xi32, #tpu.memory_space<smem>>) -> (i32, i32, i32) {
    %c0_i32 = arith.constant 0 : i32
    %c0_i32_0 = arith.constant 0 : i32
    %c0_i32_1 = arith.constant 0 : i32
    %c0_i32_2 = arith.constant 0 : i32
    return %c0_i32, %c0_i32_0, %c0_i32_1 : i32, i32, i32
  }
  func.func @transform_16(%arg0: i32, %arg1: memref<16xi32, #tpu.memory_space<smem>>) -> (i32, i32) {
    %c0_i32 = arith.constant 0 : i32
    %c0_i32_0 = arith.constant 0 : i32
    %c0_i32_1 = arith.constant 0 : i32
    return %c0_i32, %c0_i32_0 : i32, i32
  }
  func.func @transform_17(%arg0: i32, %arg1: memref<16xi32, #tpu.memory_space<smem>>) -> (i32, i32) {
    %c0_i32 = arith.constant 0 : i32
    %c0_i32_0 = arith.constant 0 : i32
    %c0_i32_1 = arith.constant 0 : i32
    return %c0_i32, %c0_i32_0 : i32, i32
  }
  func.func @transform_18(%arg0: i32, %arg1: memref<16xi32, #tpu.memory_space<smem>>) -> (i32, i32) {
    %c0_i32 = arith.constant 0 : i32
    %c0_i32_0 = arith.constant 0 : i32
    %c0_i32_1 = arith.constant 0 : i32
    return %c0_i32, %c0_i32_0 : i32, i32
  }
  func.func @transform_19(%arg0: i32, %arg1: memref<16xi32, #tpu.memory_space<smem>>) -> (i32, i32) {
    %c0_i32 = arith.constant 0 : i32
    %c0_i32_0 = arith.constant 0 : i32
    %c0_i32_1 = arith.constant 0 : i32
    return %c0_i32, %c0_i32_0 : i32, i32
  }
}

</mosaic_0001>

<bundles_post_ra>
// kernel: tpu_custom_call.1
= control target key start
LH: loop header
LB: loop body
LE: loop exit
PB: predicated region body
PF: predicated region fallthrough
CT: control target
= control target key end

     0   :  { %s3646_s0 = inlined_call_operand.vmem [shape: s32[16], index: 0, kind: input, shape index: {}]   ;;  %s3647_s1 = inlined_call_operand.vmem [shape: s32[16,1], index: 1, kind: input, shape index: {}]   ;;  %s3648_s2 = inlined_call_operand.vmem [shape: f32[1,16], index: 2, kind: input, shape index: {}]   ;;  %s3649_s3 = inlined_call_operand.vmem [shape: f32[512,32], index: 3, kind: input, shape index: {}]   ;;  %s3650_s4 = inlined_call_operand.vmem [shape: f32[8,32], index: 4, kind: input, shape index: {}]   ;;  %s3651_s5 = inlined_call_operand.vmem [shape: f32[2,1,32], index: 5, kind: input, shape index: {}]   ;;  %s3652_s6 = inlined_call_operand.vmem [shape: f32[2,1,32], index: 6, kind: input, shape index: {}]   ;;  %s3653_s7 = inlined_call_operand.vmem [shape: bf16[2,32,96], index: 7, kind: input, shape index: {}]   ;;  %s3654_s8 = inlined_call_operand.vmem [shape: f32[2,1,96], index: 8, kind: input, shape index: {}]   ;;  %s3655_s9 = inlined_call_operand.vmem [shape: bf16[2,32,32], index: 9, kind: input, shape index: {}]   ;;  %s3656_s10 = inlined_call_operand.vmem [shape: f32[2,1,32], index: 10, kind: input, shape index: {}]   ;;  %s3657_s11 = inlined_call_operand.vmem [shape: f32[2,1,32], index: 11, kind: input, shape index: {}]   ;;  %s3658_s12 = inlined_call_operand.vmem [shape: f32[2,1,32], index: 12, kind: input, shape index: {}]   ;;  %s3659_s13 = inlined_call_operand.vmem [shape: bf16[2,32,128], index: 13, kind: input, shape index: {}]   ;;  %s3660_s14 = inlined_call_operand.vmem [shape: f32[2,1,128], index: 14, kind: input, shape index: {}]   ;;  %s3661_s15 = inlined_call_operand.vmem [shape: bf16[2,128,32], index: 15, kind: input, shape index: {}]   ;;  %s3662_s16 = inlined_call_operand.vmem [shape: f32[2,1,32], index: 16, kind: input, shape index: {}]   ;;  %s3663_s17 = inlined_call_operand.vmem [shape: f32[1,32], index: 17, kind: input, shape index: {}]   ;;  %s3664_s18 = inlined_call_operand.vmem [shape: f32[1,32], index: 18, kind: input, shape index: {}]   ;;  %s3665_s19 = inlined_call_operand.hbm [shape: f32[16,512], index: 19, kind: output, shape index: {0}]   ;;  %s3666_s20 = inlined_call_operand.hbm [shape: f32[1,128], index: 20, kind: output, shape index: {1}]  }
   0x1   :  { %3679 = sst [smem:[#allocation11_spill]] %s3646_s0 }
   0x2   :  { %3680 = sst [smem:[#allocation12_spill]] %s3647_s1  ;;  %s3696_s23 = sld [smem:[#allocation11_spill]] }
   0x3   :  { %3681 = sst [smem:[#allocation13_spill]] %s3648_s2 }
   0x4   :  { %3682 = sst [smem:[#allocation14_spill]] %s3649_s3 }
   0x5   :  { %3683 = sst [smem:[#allocation15_spill]] %s3650_s4 }
   0x6   :  { %3684 = sst [smem:[#allocation16_spill]] %s3655_s9 }
   0x7   :  { %3685 = sst [smem:[#allocation17_spill]] %s3656_s10 }
   0x8   :  { %3686 = sst [smem:[#allocation18_spill]] %s3657_s11 }
   0x9   :  { %3687 = sst [smem:[#allocation19_spill]] %s3658_s12 }
   0xa   :  { %3688 = sst [smem:[#allocation20_spill]] %s3659_s13 }
   0xb   :  { %3689 = sst [smem:[#allocation21_spill]] %s3660_s14  ;;  %s26_s14 = sshll.u32 %s3696_s23, 4  ;;  %s27_s14 = int_to_ptr.vmem [resolvable:$true] %s26_s14 }
   0xc   :  { %3690 = sst [smem:[#allocation22_spill]] %s3661_s15  ;;  %s2661_s24 = scalar_lea.vmem %s27_s14, 16 }
   0xd   :  { %3691 = sst [smem:[#allocation23_spill]] %s3662_s16  ;;  %p2662_p0 = scmp.ne.s32.totalorder %s27_s14, %s2661_s24 }
   0xe   :  { %3692 = sst [smem:[#allocation24_spill]] %s3663_s17  ;;  %p2666_p1 = scmp.lt.s32.totalorder %s27_s14, %s27_s14 }
   0xf   :  { %3693 = sst [smem:[#allocation25_spill]] %s3664_s18  ;;  %p2667_p2 = scmp.lt.s32.totalorder %s2661_s24, %s2661_s24 }
  0x10   :  { %3694 = sst [smem:[#allocation26_spill]] %s3665_s19 }
  0x11   :  { %3695 = sst [smem:[#allocation27_spill]] %s3666_s20  ;;  %p2668_p3 = por %p2667_p2, %p2666_p1 }
  0x13   :  { %p2669_p4 = pnand %p2668_p3, %p2662_p0 }
  0x15   :  { %2672 = shalt.err (!%p2669_p4)  }
  0x16   :  { %s2723_s2 = smov [#allocation3]  }
  0x17   :  { %29 = dma.vmem_to_smem %s27_s14, 16, %s2723_s2, [#allocation2] }
  0x18   :  { %2717 = dma.done.wait [#allocation2], 16 }
  0x19   :  { %2718 = vsyncadd [#allocation2], 4294967280 }
  0x1a   :  { %31 = sfence }
  0x1b   :  { %32 = vsyncpa [#allocation5], 0  ;;  %s71_s25 = sld [smem:[#allocation3]]  ;;  %s2158_s3 = sld [smem:[#allocation3 + $0x1]]  ;;  %vm161_vm0 = vcmask 1040384   ;;  %vm163_vm1 = vcmask 1041408  }
  0x1c   :  { %s2159_s26 = sld [smem:[#allocation3 + $0x2]]  ;;  %s2160_s27 = sld [smem:[#allocation3 + $0x3]]  ;;  %vm165_vm2 = vcmask 1042432   ;;  %vm167_vm3 = vcmask 1043456   ;;  %vm169_vm4 = vcmask 1044480   ;;  %vm171_vm5 = vcmask 1045504  }
  0x1d   :  { %s2161_s28 = sld [smem:[#allocation3 + $0x4]]  ;;  %s2162_s4 = sld [smem:[#allocation3 + $0x5]]  ;;  %vm173_vm6 = vcmask 1046528   ;;  %vm233_vm7 = vcmask 261120  }
  0x1e   :  { %s2163_s29 = sld [smem:[#allocation3 + $0x6]]  ;;  %s2164_s30 = sld [smem:[#allocation3 + $0x7]] }
  0x1f   :  { %s2846_s0 = sld [smem:[#allocation3 + $0x8]]  ;;  %s2848_s14 = sld [smem:[#allocation3 + $0x9]] }
  0x20   :  { %s2850_s21 = sld [smem:[#allocation3 + $0xa]]  ;;  %s2852_s1 = sld [smem:[#allocation3 + $0xb]] }
  0x21   :  { %s3697_s24 = sld [smem:[#allocation14_spill]]  ;;  %s3698_s22 = sld [smem:[#allocation15_spill]] }
  0x22   :  { %s2170_s19 = sld [smem:[#allocation3 + $0xd]] }
  0x27   :  { %s72_s2 = scalar_lea.vmem %s3697_s24, %s71_s25  ;;  %s75_s18 = scalar_lea.vmem %s3697_s24, %s2158_s3  ;;  %v182_v20 = vld [vmem:[%s3698_s22] sm:$0xff] }
  0x28   :  { %v73_v0 = vld [vmem:[%s72_s2] sm:$0x1]  ;;  %s78_s15 = scalar_lea.vmem %s3697_s24, %s2159_s26  ;;  %s81_s13 = scalar_lea.vmem %s3697_s24, %s2160_s27 }
  0x29   :  { %v76_v1 = vld [vmem:[%s75_s18] sm:$0x1]  ;;  %s84_s25 = scalar_lea.vmem %s3697_s24, %s2161_s28  ;;  %s87_s18 = scalar_lea.vmem %s3697_s24, %s2162_s4 }
  0x2a   :  { %v79_v2 = vld [vmem:[%s78_s15] sm:$0x1]  ;;  %v120_v4 = vrot.slane %v76_v1, 7  ;;  %s90_s11 = scalar_lea.vmem %s3697_s24, %s2163_s29  ;;  %s93_s9 = scalar_lea.vmem %s3697_s24, %s2164_s30 }
  0x2b   :  { %v82_v3 = vld [vmem:[%s81_s13] sm:$0x1]  ;;  %v123_v7 = vrot.slane %v79_v2, 6  ;;  %s96_s20 = scalar_lea.vmem %s3697_s24, %s2846_s0  ;;  %s99_s27 = scalar_lea.vmem %s3697_s24, %s2848_s14 }
  0x2c   :  { %v85_v5 = vld [vmem:[%s84_s25] sm:$0x1]  ;;  %v126_v8 = vrot.slane %v82_v3, 5  ;;  %v162_v13 = vsel %vm161_vm0, %v73_v0, %v120_v4  ;;  %s102_s29 = scalar_lea.vmem %s3697_s24, %s2850_s21  ;;  %s105_s2 = scalar_lea.vmem %s3697_s24, %s2852_s1 }
  0x2d   :  { %v88_v6 = vld [vmem:[%s87_s18] sm:$0x1]  ;;  %v129_v11 = vrot.slane %v85_v5, 4  ;;  %v164_v16 = vsel %vm163_vm1, %v162_v13, %v123_v7  ;;  %s2169_s14 = sld [smem:[#allocation3 + $0xc]]  ;;  %s2171_s18 = sld [smem:[#allocation3 + $0xe]] }
  0x2e   :  { %v91_v9 = vld [vmem:[%s90_s11] sm:$0x1]  ;;  %v132_v12 = vrot.slane %v88_v6, 3  ;;  %v166_v19 = vsel %vm165_vm2, %v164_v16, %v126_v8  ;;  %s2172_s21 = sld [smem:[#allocation3 + $0xf]]  ;;  %s111_s13 = scalar_lea.vmem %s3697_s24, %s2170_s19 }
  0x2f   :  { %v94_v10 = vld [vmem:[%s93_s9] sm:$0x1]  ;;  %v135_v14 = vrot.slane %v91_v9, 2  ;;  %v168_v23 = vsel %vm167_vm3, %v166_v19, %v129_v11 }
  0x30   :  { %v138_v15 = vrot.slane %v94_v10, 1  ;;  %v97_v17 = vld [vmem:[%s96_s20] sm:$0x1]  ;;  %v170_v26 = vsel %vm169_vm4, %v168_v23, %v132_v12 }
  0x31   :  { %v100_v18 = vld [vmem:[%s99_s27] sm:$0x1]  ;;  %v172_v28 = vsel %vm171_vm5, %v170_v26, %v135_v14 }
  0x32   :  { %v103_v21 = vld [vmem:[%s102_s29] sm:$0x1]  ;;  %v141_v24 = vrot.slane %v100_v18, 7  ;;  %v174_v30 = vsel %vm173_vm6, %v172_v28, %v138_v15 }
  0x33   :  { %v106_v22 = vld [vmem:[%s105_s2] sm:$0x1]  ;;  %v144_v25 = vrot.slane %v103_v21, 6  ;;  %v2906_v32 = vadd.f32 %v182_v20, %v174_v30  ;;  %s108_s17 = scalar_lea.vmem %s3697_s24, %s2169_s14  ;;  %s114_s15 = scalar_lea.vmem %s3697_s24, %s2171_s18 }
  0x34   :  { %v147_v27 = vrot.slane %v106_v22, 5  ;;  %v175_v29 = vsel %vm161_vm0, %v97_v17, %v141_v24  ;;  %v109_v34 = vld [vmem:[%s108_s17] sm:$0x1]  ;;  %s117_s26 = scalar_lea.vmem %s3697_s24, %s2172_s21 }
  0x35   :  { %v176_v31 = vsel %vm163_vm1, %v175_v29, %v144_v25  ;;  %v234_v33 = vsel %vm233_vm7, %v2906_v32, 0.0  ;;  %v112_v36 = vld [vmem:[%s111_s13] sm:$0x1]  ;;  %v150_v38 = vrot.slane %v109_v34, 4 }
  0x36   :  { %v177_v35 = vsel %vm165_vm2, %v176_v31, %v147_v27  ;;  %235 = vadd.xlane.f32.xlu0 %v234_v33  ;;  %v115_v37 = vld [vmem:[%s114_s15] sm:$0x1]  ;;  %v153_v40 = vrot.slane %v112_v36, 3 }
  0x37   :  { %v118_v39 = vld [vmem:[%s117_s26] sm:$0x1]  ;;  %v156_v41 = vrot.slane %v115_v37, 2  ;;  %v178_v43 = vsel %vm167_vm3, %v177_v35, %v150_v38 }
  0x38   :  { %v159_v42 = vrot.slane %v118_v39, 1  ;;  %v179_v44 = vsel %vm169_vm4, %v178_v43, %v153_v40 }
  0x39   :  { %v180_v45 = vsel %vm171_vm5, %v179_v44, %v156_v41 }
  0x3a   :  { %v181_v46 = vsel %vm173_vm6, %v180_v45, %v159_v42 }
  0x3b   :  { %v2927_v47 = vadd.f32 %v182_v20, %v181_v46 }
  0x3d   :  { %v237_v48 = vsel %vm233_vm7, %v2927_v47, 0.0 }
  0x3e   :  { %238 = vadd.xlane.f32.xlu0 %v237_v48 }
  0x3f   :  { %33 = vsyncpa [#allocation7], 0  ;;  %v2553_v59 = vld [vmem:[%s3653_s7] sm:$0xff]   ;;  %v2724_v60 = vmov 0.0   ;;  %v2554_v61 = vld [vmem:[%s3653_s7 + $0x8] sm:$0xff]   ;;  %vm2725_vm8 = vmmov 0   ;;  %v185_v25 = vlaneseq }
  0x40   :  { %2370 = vmatprep.subr.bf16.mxu1 %v2724_v60  ;;  %2396 = vmatprep.subr.bf16.mxu0 %v2724_v60  ;;  %v2174_v6 = vld [vmem:[%s3651_s5] ss:$0 sm:$0xff]  ;;  %s2726_s14 = smov 96   ;;  %s2727_s19 = smov 80   ;;  %vm349_vm9 = vcmask 130048  }
  0x41   :  { %2371 = vmatpush3.bf16.msra.mxu1 %v2553_v59  ;;  %2374 = vmatprep.mubr.msk.bf16.mxu1 %vm2725_vm8, %v2724_v60  ;;  %v2175_v10 = vld [vmem:[%s3652_s6] ss:$0 sm:$0xff]  ;;  %s2728_s18 = smov 112   ;;  %v186_v26 = vshrl.u32 %v185_v25, 7  ;;  %s3699_s16 = sld [smem:[#allocation13_spill]]  ;;  %v2978_v28 = vand.u32 127, %v185_v25 }
  0x42   :  { %2372 = vmatprep.subr.bf16.mxu1 %v2724_v60  ;;  %2398 = vmatprep.mubr.msk.bf16.mxu0 %vm2725_vm8, %v2724_v60  ;;  %v2176_v15 = vld [vmem:[%s3654_s8] ss:$0 sm:$0xff]  ;;  %v2729_v35 = vmov -1e+09   ;;  %s2730_s17 = smov 64   ;;  %s2731_s11 = smov 48  }
  0x43   :  { %v187_v30 = vadd.s32 8, %v186_v26  ;;  %vm207_vm10 = vcmp.ge.s32.totalorder %v2978_v28, 8  ;;  %vm208_vm11 = vcmp.lt.s32.totalorder %v2978_v28, 16  ;;  %vm197_vm12 = vcmp.lt.s32.totalorder %v2978_v28, 8  ;;  %s3700_s9 = sld [smem:[#allocation16_spill]]  ;;  %s2732_s20 = smov 16  }
  0x44   :  { %vm214_vm13 = vcmp.le.s32.totalorder %v2978_v28, %v186_v26  ;;  %v226_v33 = vsub.s32 0, %v186_v26  ;;  %vm209_vm14 = vmand %vm207_vm10, %vm208_vm11  ;;  %s3701_s27 = sld [smem:[#allocation17_spill]]  ;;  %s3702_s29 = sld [smem:[#allocation20_spill]] }
  0x45   :  { %2373 = vmatpush3.bf16.msra.mxu1 %v2554_v61  ;;  %vm215_vm15 = vcmp.le.s32.totalorder %v2978_v28, %v187_v30  ;;  %vm216_vm0 = vmand %vm197_vm12, %vm214_vm13  ;;  %s3703_s25 = sld [smem:[#allocation18_spill]]  ;;  %s3704_s1 = sld [smem:[#allocation19_spill]] }
  0x46   :  { %2378 = vmatprep.subr.bf16.mxu1 %v2724_v60  ;;  %vm217_vm1 = vmand %vm209_vm14, %vm215_vm15  ;;  %v221_v36 = vsel %vm216_vm0, 0.0, %v2729_v35  ;;  %s3705_s13 = sld [smem:[#allocation22_spill]]  ;;  %s3706_s3 = sld [smem:[#allocation21_spill]]  ;;  %vm2079_vm14 = vcmask 7168  }
  0x47   :  { %v218_v27 = vld [vmem:[%s3699_s16] sm:$0x1]  ;;  %v222_v37 = vsel %vm217_vm1, 0.0, %v2729_v35  ;;  %s3707_s4 = sld [smem:[#allocation23_spill]]  ;;  %s3708_s26 = sld [smem:[#allocation24_spill]] }
  0x48   :  { %v2173_v29 = vadd.f32 -1.0, %v218_v27  ;;  %s3710_s2 = sld [smem:[#allocation12_spill]]  ;;  %s2734_s21 = smov [#allocation4]  }
  0x4a   :  { %v220_v31 = vmul.f32 1e+09, %v2173_v29 }
  0x4c   :  { %v227_v34 = vrot.slane %v220_v31, %v226_v33 }
  0x4e   :  { %v2985_v38 = vadd.f32 %v227_v34, %v221_v36  ;;  %v2987_v42 = vadd.f32 %v227_v34, %v222_v37 }
  0xc3   :  { %v236_v49 = vpop.xlane.xlu0 %235 }
  0xc4   :  { %v241_v50 = vmul.f32 0.03125, %v236_v49 }
  0xc6   :  { %v243_v51 = vsub.f32 %v2906_v32, %v241_v50 }
  0xc8   :  { %v245_v52 = vmul.f32 %v243_v51, %v243_v51 }
  0xca   :  { %v247_v53 = vsel %vm233_vm7, %v245_v52, 0.0 }
  0xcb   :  { %248 = vadd.xlane.f32.xlu1 %v247_v53  ;;  %v239_v54 = vpop.xlane.xlu0 %238 }
  0xcc   :  { %v242_v55 = vmul.f32 0.03125, %v239_v54 }
  0xce   :  { %v244_v56 = vsub.f32 %v2927_v47, %v242_v55 }
  0xd0   :  { %v246_v57 = vmul.f32 %v244_v56, %v244_v56 }
  0xd2   :  { %v250_v58 = vsel %vm233_vm7, %v246_v57, 0.0 }
  0xd3   :  { %251 = vadd.xlane.f32.xlu1 %v250_v58 }
 0x158   :  { %v249_v62 = vpop.xlane.xlu1 %248 }
 0x159   :  { %v253_v63 = vmul.f32 0.03125, %v249_v62 }
 0x15b   :  { %v255_v0 = vadd.f32 1e-05, %v253_v63 }
 0x15d   :  { %2581 = vrsqrt.f32 %v255_v0 }
 0x160   :  { %v252_v1 = vpop.xlane.xlu1 %251 }
 0x161   :  { %v254_v2 = vmul.f32 0.03125, %v252_v1 }
 0x163   :  { %v256_v3 = vadd.f32 1e-05, %v254_v2 }
 0x165   :  { %2583 = vrsqrt.f32 %v256_v3 }
 0x167   :  { %v2582_v4 = vpop.eup %2581 }
 0x168   :  { %v259_v5 = vmul.f32 %v2582_v4, %v243_v51 }
 0x16a   :  { %v267_v9 = vmul.f32 %v2174_v6, %v259_v5 }
 0x16c   :  { %v275_v12 = vadd.f32 %v2175_v10, %v267_v9 }
 0x16f   :  { %v2584_v7 = vpop.eup %2583 }
 0x170   :  { %v260_v8 = vmul.f32 %v2584_v7, %v244_v56 }
 0x172   :  { %v268_v11 = vmul.f32 %v2174_v6, %v260_v8 }
 0x174   :  { %v276_v13 = vadd.f32 %v2175_v10, %v268_v11 }
 0x176   :  { %v277_v14 = vpack.c.bf16 %v276_v13, %v275_v12 }
 0x178   :  { %2375 = vmatmul.mubr.msk.bf16.vlgmr.msra.gmra.mrb[0].mxu1 %vm233_vm7, %v277_v14 }
 0x179   :  { %2380 = vmatprep.mubr.msk.bf16.mxu1 %vm2725_vm8, %v2724_v60 }
 0x24b   :  { %v338_v16 = vpop.f32.mrb[0].mxu1 }
 0x24c   :  { %v2376_v17 = vpop.f32.mrb[1].mxu1  ;;  %v339_v19 = vadd.f32 %v2176_v15, %v338_v16 }
 0x24d   :  { %v341_v18 = vpop.f32.mrb[2].mxu1 }
 0x24e   :  { %v342_v20 = vadd.f32 %v2176_v15, %v341_v18  ;;  %v2377_v21 = vpop.f32.mrb[3].mxu1 }
 0x250   :  { %v2961_v22 = vpack.c.bf16 %v342_v20, %v339_v19 }
 0x252   :  { %347 = vrot.lane.b32.xlu0 %v2961_v22, %s2726_s14 }
 0x256   :  { %473 = vrot.lane.b32.xlu0 %v2961_v22, %s2727_s19 }
 0x25a   :  { %471 = vrot.lane.b32.xlu0 %v2961_v22, %s2728_s18 }
 0x2c4   :  { %v348_v23 = vpop.permute.xlu0 %347 }
 0x2c5   :  { %v354_v24 = vsel %vm349_vm9, %v348_v23, 0 }
 0x2c6   :  { %2379 = vmatpush3.bf16.xpose.msra.mxu1 %v354_v24 }
 0x2c7   :  { %2384 = vmatprep.subr.bf16.mxu1 %v2724_v60 }
 0x2c8   :  { %v474_v5 = vpop.permute.xlu0 %473 }
 0x2c9   :  { %v479_v7 = vsel %vm349_vm9, %v474_v5, 0 }
 0x2cc   :  { %v472_v8 = vpop.permute.xlu0 %471 }
 0x2cd   :  { %2381 = vmatmul.mubr.msk.bf16.vlgmr.msra.gmra.mrb[4].mxu1 %vm349_vm9, %v2961_v22 }
 0x2ce   :  { %2386 = vmatprep.mubr.msk.bf16.mxu1 %vm2725_vm8, %v2724_v60 }
 0x3a0   :  { %v390_v39 = vpop.f32.mrb[4].mxu1 }
 0x3a1   :  { %v397_v40 = vmul.f32 0.25, %v390_v39  ;;  %v2382_v41 = vpop.f32.mrb[5].mxu1 }
 0x3a2   :  { %v393_v43 = vpop.f32.mrb[6].mxu1 }
 0x3a3   :  { %v398_v44 = vmul.f32 0.25, %v393_v43  ;;  %v2383_v45 = vpop.f32.mrb[7].mxu1  ;;  %v399_v46 = vadd.f32 %v397_v40, %v2985_v38 }
 0x3a5   :  { %v401_v48 = vsel %vm349_vm9, %v399_v46, -inf  ;;  %v400_v49 = vadd.f32 %v398_v44, %v2987_v42 }
 0x3a6   :  { %402 = vmax.xlane.f32.xlu1 %v401_v48 }
 0x3a7   :  { %v404_v50 = vsel %vm349_vm9, %v400_v49, -inf }
 0x3aa   :  { %405 = vmax.xlane.f32.xlu1 %v404_v50 }
 0x433   :  { %v403_v51 = vpop.xlane.xlu1 %402 }
 0x434   :  { %v407_v52 = vsub.f32 %v399_v46, %v403_v51  ;;  %v2556_v46 = vld [vmem:[%s3700_s9 + $0x8] sm:$0xff]  }
 0x436   :  { %v409_v53 = vmul.f32 1.442695, %v407_v52 }
 0x437   :  { %v406_v54 = vpop.xlane.xlu1 %405 }
 0x438   :  { %2585 = vpow2.f32 %v409_v53  ;;  %v408_v55 = vsub.f32 %v400_v49, %v406_v54 }
 0x43a   :  { %v411_v56 = vmul.f32 1.442695, %v408_v55 }
 0x43c   :  { %2587 = vpow2.f32 %v411_v56 }
 0x442   :  { %v2586_v57 = vpop.eup %2585 }
 0x443   :  { %v413_v58 = vsel %vm349_vm9, %v2586_v57, 0.0 }
 0x444   :  { %414 = vadd.xlane.f32.xlu1 %v413_v58 }
 0x446   :  { %v2588_v59 = vpop.eup %2587 }
 0x447   :  { %v416_v61 = vsel %vm349_vm9, %v2588_v59, 0.0 }
 0x448   :  { %417 = vadd.xlane.f32.xlu1 %v416_v61  ;;  %v2187_v61 = vld [vmem:[%s3701_s27] ss:$0 sm:$0xff] }
 0x459   :  { %424 = vrot.lane.b32.xlu1 %v2961_v22, %s2730_s17 }
 0x4d1   :  { %v415_v62 = vpop.xlane.xlu1 %414 }
 0x4d2   :  { %2589 = vrcp.f32 %v415_v62 }
 0x4d5   :  { %v418_v63 = vpop.xlane.xlu1 %417 }
 0x4d6   :  { %2591 = vrcp.f32 %v418_v63 }
 0x4d9   :  { %v425_v0 = vpop.permute.xlu1 %424 }
 0x4da   :  { %2385 = vmatpush3.bf16.msra.mxu1 %v425_v0 }
 0x4db   :  { %2390 = vmatprep.subr.bf16.mxu1 %v2724_v60 }
 0x4dc   :  { %v2590_v1 = vpop.eup %2589 }
 0x4dd   :  { %v421_v3 = vmul.f32 %v2590_v1, %v2586_v57 }
 0x4e0   :  { %v2592_v2 = vpop.eup %2591 }
 0x4e1   :  { %v422_v4 = vmul.f32 %v2592_v2, %v2588_v59 }
 0x4e3   :  { %v423_v6 = vpack.c.bf16 %v422_v4, %v421_v3 }
 0x4e5   :  { %2387 = vmatmul.mubr.msk.bf16.vlgmr.msra.gmra.mrb[8].mxu1 %vm349_vm9, %v423_v6 }
 0x4e6   :  { %2391 = vmatpush3.bf16.xpose.msra.mxu1 %v479_v7  ;;  %2392 = vmatprep.mubr.msk.bf16.mxu1 %vm2725_vm8, %v2724_v60 }
 0x4e7   :  { %2402 = vmatprep.subr.bf16.mxu1 %v2724_v60 }
 0x4ed   :  { %2393 = vmatmul.mubr.msk.bf16.vlgmr.msra.gmra.mrb[12].mxu1 %vm349_vm9, %v472_v8 }
 0x4ee   :  { %2406 = vmatprep.mubr.msk.bf16.mxu1 %vm2725_vm8, %v2724_v60 }
 0x5b8   :  { %v3006_v9 = vpop.f32.mrb[8].mxu1 }
 0x5b9   :  { %v2388_v10 = vpop.f32.mrb[9].mxu1 }
 0x5ba   :  { %v467_v11 = vpop.f32.mrb[10].mxu1 }
 0x5bb   :  { %v2389_v12 = vpop.f32.mrb[11].mxu1 }
 0x5c0   :  { %v515_v13 = vpop.f32.mrb[12].mxu1 }
 0x5c1   :  { %v522_v14 = vmul.f32 0.25, %v515_v13  ;;  %v2394_v15 = vpop.f32.mrb[13].mxu1 }
 0x5c2   :  { %v518_v16 = vpop.f32.mrb[14].mxu1  ;;  %v2557_v15 = vld [vmem:[%s3702_s29] sm:$0xff]  }
 0x5c3   :  { %v523_v17 = vmul.f32 0.25, %v518_v16  ;;  %v2395_v18 = vpop.f32.mrb[15].mxu1  ;;  %v524_v19 = vadd.f32 %v522_v14, %v2985_v38  ;;  %v2558_v16 = vld [vmem:[%s3702_s29 + $0x8] sm:$0xff]  }
 0x5c5   :  { %v526_v20 = vsel %vm349_vm9, %v524_v19, -inf  ;;  %v525_v21 = vadd.f32 %v523_v17, %v2987_v42 }
 0x5c6   :  { %527 = vmax.xlane.f32.xlu0 %v526_v20 }
 0x5c7   :  { %v529_v23 = vsel %vm349_vm9, %v525_v21, -inf }
 0x5c8   :  { %530 = vmax.xlane.f32.xlu1 %v529_v23 }
 0x653   :  { %v528_v24 = vpop.xlane.xlu0 %527 }
 0x654   :  { %v532_v25 = vsub.f32 %v524_v19, %v528_v24 }
 0x655   :  { %v531_v26 = vpop.xlane.xlu1 %530 }
 0x656   :  { %v534_v27 = vmul.f32 1.442695, %v532_v25  ;;  %v533_v29 = vsub.f32 %v525_v21, %v531_v26  ;;  %v2188_v25 = vld [vmem:[%s3703_s25] ss:$0 sm:$0xff] }
 0x658   :  { %2593 = vpow2.f32 %v534_v27  ;;  %v536_v30 = vmul.f32 1.442695, %v533_v29 }
 0x65a   :  { %2595 = vpow2.f32 %v536_v30 }
 0x662   :  { %v2594_v31 = vpop.eup %2593 }
 0x663   :  { %v538_v33 = vsel %vm349_vm9, %v2594_v31, 0.0 }
 0x664   :  { %v2596_v34 = vpop.eup %2595  ;;  %539 = vadd.xlane.f32.xlu0 %v538_v33 }
 0x665   :  { %v541_v35 = vsel %vm349_vm9, %v2596_v34, 0.0 }
 0x668   :  { %542 = vadd.xlane.f32.xlu0 %v541_v35 }
 0x67e   :  { %549 = vrot.lane.b32.xlu0 %v2961_v22, %s2731_s11  ;;  %v2555_v22 = vld [vmem:[%s3700_s9] sm:$0xff]  }
 0x67f   :  { %2403 = vmatpush3.bf16.msra.mxu1 %v2555_v22  ;;  %v2566_v22 = vld [vmem:[%s3705_s13 + $0x38] sm:$0xff]  }
 0x680   :  { %2404 = vmatprep.subr.bf16.mxu1 %v2724_v60 }
 0x683   :  { %2405 = vmatpush3.bf16.msra.mxu1 %v2556_v46  ;;  %v2190_v46 = vld [vmem:[%s3706_s3] ss:$0 sm:$0xff] }
 0x684   :  { %2418 = vmatprep.subr.bf16.mxu1 %v2724_v60 }
 0x6f1   :  { %v540_v36 = vpop.xlane.xlu0 %539 }
 0x6f2   :  { %2597 = vrcp.f32 %v540_v36 }
 0x6f5   :  { %v543_v37 = vpop.xlane.xlu0 %542 }
 0x6f6   :  { %2599 = vrcp.f32 %v543_v37  ;;  %v2559_v37 = vld [vmem:[%s3705_s13] sm:$0xff]  }
 0x6f9   :  { %v550_v39 = vpop.permute.xlu0 %549 }
 0x6fa   :  { %2397 = vmatpush3.bf16.msra.mxu0 %v550_v39  ;;  %v2560_v39 = vld [vmem:[%s3705_s13 + $0x8] sm:$0xff]  }
 0x6fb   :  { %2410 = vmatprep.subr.bf16.mxu0 %v2724_v60 }
 0x6fc   :  { %v2598_v40 = vpop.eup %2597 }
 0x6fd   :  { %v546_v43 = vmul.f32 %v2598_v40, %v2594_v31  ;;  %v2189_v31 = vld [vmem:[%s3704_s1] ss:$0 sm:$0xff]  ;;  %v2561_v40 = vld [vmem:[%s3705_s13 + $0x10] sm:$0xff]  }
 0x700   :  { %v2600_v41 = vpop.eup %2599 }
 0x701   :  { %v547_v44 = vmul.f32 %v2600_v41, %v2596_v34  ;;  %v2562_v41 = vld [vmem:[%s3705_s13 + $0x18] sm:$0xff]  }
 0x703   :  { %v548_v45 = vpack.c.bf16 %v547_v44, %v546_v43  ;;  %v2563_v43 = vld [vmem:[%s3705_s13 + $0x20] sm:$0xff]   ;;  %v2564_v44 = vld [vmem:[%s3705_s13 + $0x28] sm:$0xff]  }
 0x705   :  { %2399 = vmatmul.mubr.msk.bf16.vlgmr.msra.gmra.mrb[0].mxu0 %vm349_vm9, %v548_v45  ;;  %v2565_v45 = vld [vmem:[%s3705_s13 + $0x30] sm:$0xff]  }
 0x706   :  { %2414 = vmatprep.mubr.msk.bf16.mxu0 %vm2725_vm8, %v2724_v60  ;;  %2411 = vmatpush3.bf16.msra.mxu0 %v2557_v15 }
 0x707   :  { %2412 = vmatprep.subr.bf16.mxu0 %v2724_v60 }
 0x70a   :  { %2413 = vmatpush3.bf16.msra.mxu0 %v2558_v16 }
 0x70b   :  { %2438 = vmatprep.subr.bf16.mxu0 %v2724_v60 }
 0x7d8   :  { %v589_v48 = vpop.f32.mrb[0].mxu0 }
 0x7d9   :  { %v2400_v49 = vpop.f32.mrb[1].mxu0 }
 0x7da   :  { %v592_v50 = vpop.f32.mrb[2].mxu0 }
 0x7db   :  { %v2541_v51 = vpack.i.bf16 %v592_v50, %v589_v48  ;;  %v2401_v52 = vpop.f32.mrb[3].mxu0 }
 0x7dd   :  { %2542 = vrot.lane.b32.xlu1 %v2541_v51, %s2732_s20 }
 0x84f   :  { %v2543_v53 = vpop.permute.xlu1 %2542 }
 0x850   :  { %v2545_v54 = vunpack.i.h.bf16 %v2543_v53  ;;  %v2544_v55 = vunpack.i.l.bf16 %v2543_v53 }
 0x852   :  { %v605_v56 = vsel %vm349_vm9, %v467_v11, %v2545_v54  ;;  %v604_v57 = vsel %vm349_vm9, %v3006_v9, %v2544_v55 }
 0x853   :  { %v606_v58 = vpack.c.bf16 %v605_v56, %v604_v57 }
 0x855   :  { %2407 = vmatmul.mubr.msk.bf16.vlgmr.msra.gmra.mrb[16].mxu1 %vm233_vm7, %v606_v58 }
 0x856   :  { %2434 = vmatprep.mubr.msk.bf16.mxu1 %vm2725_vm8, %v2724_v60  ;;  %2419 = vmatpush3.bf16.msra.mxu1 %v2559_v37 }
 0x857   :  { %2420 = vmatprep.subr.bf16.mxu1 %v2724_v60 }
 0x85a   :  { %2421 = vmatpush3.bf16.msra.mxu1 %v2560_v39 }
 0x85b   :  { %2422 = vmatprep.subr.bf16.mxu1 %v2724_v60 }
 0x85e   :  { %2423 = vmatpush3.bf16.msra.mxu1 %v2561_v40 }
 0x85f   :  { %2424 = vmatprep.subr.bf16.mxu1 %v2724_v60 }
 0x862   :  { %2425 = vmatpush3.bf16.msra.mxu1 %v2562_v41 }
 0x863   :  { %2426 = vmatprep.subr.bf16.mxu1 %v2724_v60 }
 0x866   :  { %2427 = vmatpush3.bf16.msra.mxu1 %v2563_v43  ;;  %v2205_v43 = vld [vmem:[%s3651_s5 + $0x1] ss:$0 sm:$0xff] }
 0x867   :  { %2428 = vmatprep.subr.bf16.mxu1 %v2724_v60 }
 0x86a   :  { %2429 = vmatpush3.bf16.msra.mxu1 %v2564_v44 }
 0x86b   :  { %2430 = vmatprep.subr.bf16.mxu1 %v2724_v60 }
 0x86e   :  { %2431 = vmatpush3.bf16.msra.mxu1 %v2565_v45 }
 0x86f   :  { %2432 = vmatprep.subr.bf16.mxu1 %v2724_v60 }
 0x872   :  { %2433 = vmatpush3.bf16.msra.mxu1 %v2566_v22 }
 0x873   :  { %2464 = vmatprep.subr.bf16.mxu1 %v2724_v60 }
 0x928   :  { %v660_v59 = vpop.f32.mrb[16].mxu1 }
 0x929   :  { %v667_v62 = vadd.f32 %v660_v59, %v2906_v32  ;;  %v2408_v63 = vpop.f32.mrb[17].mxu1 }
 0x92a   :  { %v663_v0 = vpop.f32.mrb[18].mxu1 }
 0x92b   :  { %v3039_v1 = vadd.f32 %v2187_v61, %v667_v62  ;;  %v668_v2 = vadd.f32 %v663_v0, %v2927_v47  ;;  %v2409_v3 = vpop.f32.mrb[19].mxu1 }
 0x92d   :  { %v3042_v4 = vadd.f32 %v2187_v61, %v668_v2  ;;  %v680_v5 = vsel %vm233_vm7, %v3039_v1, 0.0 }
 0x92e   :  { %681 = vadd.xlane.f32.xlu1 %v680_v5 }
 0x92f   :  { %v683_v6 = vsel %vm233_vm7, %v3042_v4, 0.0 }
 0x930   :  { %684 = vadd.xlane.f32.xlu0 %v683_v6 }
 0x9bb   :  { %v682_v7 = vpop.xlane.xlu1 %681 }
 0x9bc   :  { %v686_v8 = vmul.f32 0.03125, %v682_v7 }
 0x9bd   :  { %v685_v32 = vpop.xlane.xlu0 %684 }
 0x9be   :  { %v688_v9 = vsub.f32 %v3039_v1, %v686_v8  ;;  %v687_v10 = vmul.f32 0.03125, %v685_v32 }
 0x9c0   :  { %v689_v11 = vsub.f32 %v3042_v4, %v687_v10  ;;  %v690_v47 = vmul.f32 %v688_v9, %v688_v9 }
 0x9c2   :  { %v692_v12 = vsel %vm233_vm7, %v690_v47, 0.0  ;;  %v691_v13 = vmul.f32 %v689_v11, %v689_v11  ;;  %v2202_v47 = vld [vmem:[%s3707_s4] ss:$0 sm:$0xff] }
 0x9c3   :  { %693 = vadd.xlane.f32.xlu0 %v692_v12 }
 0x9c4   :  { %v695_v14 = vsel %vm233_vm7, %v691_v13, 0.0 }
 0x9c5   :  { %696 = vadd.xlane.f32.xlu1 %v695_v14 }
 0xa50   :  { %v694_v17 = vpop.xlane.xlu0 %693 }
 0xa51   :  { %v698_v18 = vmul.f32 0.03125, %v694_v17 }
 0xa52   :  { %v697_v19 = vpop.xlane.xlu1 %696 }
 0xa53   :  { %v700_v20 = vadd.f32 1e-05, %v698_v18  ;;  %v699_v21 = vmul.f32 0.03125, %v697_v19 }
 0xa55   :  { %2601 = vrsqrt.f32 %v700_v20  ;;  %v701_v23 = vadd.f32 1e-05, %v699_v21 }
 0xa57   :  { %2603 = vrsqrt.f32 %v701_v23 }
 0xa5f   :  { %v2602_v24 = vpop.eup %2601 }
 0xa60   :  { %v704_v26 = vmul.f32 %v2602_v24, %v688_v9 }
 0xa61   :  { %v2604_v27 = vpop.eup %2603 }
 0xa62   :  { %v712_v29 = vmul.f32 %v2188_v25, %v704_v26  ;;  %v705_v30 = vmul.f32 %v2604_v27, %v689_v11 }
 0xa64   :  { %v713_v33 = vmul.f32 %v2188_v25, %v705_v30  ;;  %v720_v34 = vadd.f32 %v2189_v31, %v712_v29 }
 0xa66   :  { %v721_v35 = vadd.f32 %v2189_v31, %v713_v33  ;;  %v2567_v31 = vld [vmem:[%s3653_s7 + $0x10] sm:$0xff]   ;;  %v2568_v33 = vld [vmem:[%s3653_s7 + $0x18] sm:$0xff]   ;;  %s2117_s7 = sshll.u32 %s2734_s21, 4  ;;  %s2118_s7 = int_to_ptr.vmem [resolvable:$true] %s2117_s7 }
 0xa67   :  { %s2673_s16 = scalar_lea.vmem %s2118_s7, 1024  ;;  %p2678_p6 = scmp.lt.s32.totalorder %s2118_s7, %s2118_s7 }
 0xa68   :  { %v722_v36 = vpack.c.bf16 %v721_v35, %v720_v34  ;;  %p2674_p5 = scmp.ne.s32.totalorder %s2118_s7, %s2673_s16  ;;  %p2679_p7 = scmp.lt.s32.totalorder %s2673_s16, %s2673_s16 }
 0xa6a   :  { %2415 = vmatmul.mubr.msk.bf16.vlgmr.msra.gmra.mrb[4].mxu0 %vm233_vm7, %v722_v36  ;;  %p2680_p8 = por %p2679_p7, %p2678_p6 }
 0xa6b   :  { %2442 = vmatprep.mubr.msk.bf16.mxu0 %vm2725_vm8, %v2724_v60  ;;  %2439 = vmatpush3.bf16.msra.mxu0 %v2567_v31 }
 0xa6c   :  { %2440 = vmatprep.subr.bf16.mxu0 %v2724_v60  ;;  %p2681_p9 = pnand %p2680_p8, %p2674_p5 }
 0xa6f   :  { %2441 = vmatpush3.bf16.msra.mxu0 %v2568_v33 }
 0xa70   :  { %2446 = vmatprep.subr.bf16.mxu0 %v2724_v60 }
 0xb3d   :  { %v783_v48 = vpop.f32.mrb[4].mxu0 }
 0xb3e   :  { %v784_v49 = vadd.f32 %v2190_v46, %v783_v48  ;;  %v2416_v50 = vpop.f32.mrb[5].mxu0  ;;  %v2206_v48 = vld [vmem:[%s3652_s6 + $0x1] ss:$0 sm:$0xff] }
 0xb3f   :  { %v786_v51 = vpop.f32.mrb[6].mxu0 }
 0xb40   :  { %v792_v52 = vmul.f32 %v784_v49, %v784_v49  ;;  %v787_v53 = vadd.f32 %v2190_v46, %v786_v51  ;;  %v2417_v54 = vpop.f32.mrb[7].mxu0  ;;  %v790_v6 = vmul.f32 0.5, %v784_v49 }
 0xb42   :  { %v794_v55 = vmul.f32 %v792_v52, %v784_v49  ;;  %v793_v56 = vmul.f32 %v787_v53, %v787_v53  ;;  %v791_v7 = vmul.f32 0.5, %v787_v53 }
 0xb44   :  { %v796_v57 = vmul.f32 0.044715, %v794_v55  ;;  %v795_v58 = vmul.f32 %v793_v56, %v787_v53 }
 0xb46   :  { %v798_v59 = vadd.f32 %v796_v57, %v784_v49  ;;  %v797_v61 = vmul.f32 0.044715, %v795_v58 }
 0xb48   :  { %v800_v62 = vmul.f32 0.7978846, %v798_v59  ;;  %v799_v63 = vadd.f32 %v797_v61, %v787_v53  ;;  %v2212_v53 = vld [vmem:[%s3654_s8 + $0x1] ss:$0 sm:$0xff] }
 0xb4a   :  { %2605 = vtanh.f32 %v800_v62  ;;  %v801_v0 = vmul.f32 0.7978846, %v799_v63 }
 0xb4c   :  { %2607 = vtanh.f32 %v801_v0 }
 0xb54   :  { %v2606_v2 = vpop.eup %2605 }
 0xb55   :  { %v804_v3 = vadd.f32 1.0, %v2606_v2 }
 0xb56   :  { %v2608_v5 = vpop.eup %2607 }
 0xb57   :  { %v805_v8 = vadd.f32 1.0, %v2608_v5  ;;  %v806_v32 = vmul.f32 %v804_v3, %v790_v6 }
 0xb59   :  { %v807_v9 = vmul.f32 %v805_v8, %v791_v7 }
 0xb5b   :  { %v808_v10 = vpack.c.bf16 %v807_v9, %v806_v32 }
 0xb5d   :  { %2435 = vmatmul.mubr.bf16.vlgmr.msra.gmra.mrb[20].mxu1 %v808_v10 }
 0xb5e   :  { %2466 = vmatprep.mubr.msk.bf16.mxu1 %vm2725_vm8, %v2724_v60 }
 0xc30   :  { %v907_v11 = vpop.f32.mrb[20].mxu1 }
 0xc31   :  { %v914_v12 = vadd.f32 %v907_v11, %v3039_v1  ;;  %v2436_v13 = vpop.f32.mrb[21].mxu1 }
 0xc32   :  { %v910_v14 = vpop.f32.mrb[22].mxu1 }
 0xc33   :  { %v3110_v15 = vadd.f32 %v2202_v47, %v914_v12  ;;  %v915_v16 = vadd.f32 %v910_v14, %v3042_v4  ;;  %v2437_v17 = vpop.f32.mrb[23].mxu1 }
 0xc35   :  { %v3113_v18 = vadd.f32 %v2202_v47, %v915_v16  ;;  %v929_v19 = vsel %vm233_vm7, %v3110_v15, 0.0 }
 0xc36   :  { %930 = vadd.xlane.f32.xlu0 %v929_v19 }
 0xc37   :  { %v932_v20 = vsel %vm233_vm7, %v3113_v18, 0.0 }
 0xc38   :  { %933 = vadd.xlane.f32.xlu1 %v932_v20 }
 0xcc3   :  { %v931_v21 = vpop.xlane.xlu0 %930 }
 0xcc4   :  { %v935_v23 = vmul.f32 0.03125, %v931_v21 }
 0xcc5   :  { %v934_v1 = vpop.xlane.xlu1 %933 }
 0xcc6   :  { %v937_v24 = vsub.f32 %v3110_v15, %v935_v23  ;;  %v936_v25 = vmul.f32 0.03125, %v934_v1 }
 0xcc8   :  { %v938_v26 = vsub.f32 %v3113_v18, %v936_v25  ;;  %v939_v4 = vmul.f32 %v937_v24, %v937_v24 }
 0xcca   :  { %v941_v27 = vsel %vm233_vm7, %v939_v4, 0.0  ;;  %v940_v29 = vmul.f32 %v938_v26, %v938_v26 }
 0xccb   :  { %942 = vadd.xlane.f32.xlu0 %v941_v27 }
 0xccc   :  { %v944_v30 = vsel %vm233_vm7, %v940_v29, 0.0 }
 0xccd   :  { %945 = vadd.xlane.f32.xlu1 %v944_v30 }
 0xd58   :  { %v943_v34 = vpop.xlane.xlu0 %942 }
 0xd59   :  { %v947_v35 = vmul.f32 0.03125, %v943_v34 }
 0xd5a   :  { %v946_v36 = vpop.xlane.xlu1 %945 }
 0xd5b   :  { %v949_v37 = vadd.f32 1e-05, %v947_v35  ;;  %v948_v39 = vmul.f32 0.03125, %v946_v36 }
 0xd5d   :  { %2609 = vrsqrt.f32 %v949_v37  ;;  %v950_v40 = vadd.f32 1e-05, %v948_v39 }
 0xd5f   :  { %2611 = vrsqrt.f32 %v950_v40 }
 0xd67   :  { %v2610_v41 = vpop.eup %2609 }
 0xd68   :  { %v953_v44 = vmul.f32 %v2610_v41, %v937_v24 }
 0xd69   :  { %v2612_v45 = vpop.eup %2611 }
 0xd6a   :  { %v961_v22 = vmul.f32 %v2205_v43, %v953_v44  ;;  %v954_v46 = vmul.f32 %v2612_v45, %v938_v26 }
 0xd6c   :  { %v962_v49 = vmul.f32 %v2205_v43, %v954_v46  ;;  %v969_v50 = vadd.f32 %v2206_v48, %v961_v22 }
 0xd6e   :  { %v970_v51 = vadd.f32 %v2206_v48, %v962_v49 }
 0xd70   :  { %v971_v52 = vpack.c.bf16 %v970_v51, %v969_v50 }
 0xd72   :  { %2443 = vmatmul.mubr.msk.bf16.vlgmr.msra.gmra.mrb[8].mxu0 %vm233_vm7, %v971_v52 }
 0xd73   :  { %2448 = vmatprep.mubr.msk.bf16.mxu0 %vm2725_vm8, %v2724_v60 }
 0xe45   :  { %v1034_v54 = vpop.f32.mrb[8].mxu0 }
 0xe46   :  { %v2444_v55 = vpop.f32.mrb[9].mxu0  ;;  %v1035_v57 = vadd.f32 %v2212_v53, %v1034_v54 }
 0xe47   :  { %v1037_v56 = vpop.f32.mrb[10].mxu0 }
 0xe48   :  { %v1038_v58 = vadd.f32 %v2212_v53, %v1037_v56  ;;  %v2445_v59 = vpop.f32.mrb[11].mxu0 }
 0xe4a   :  { %v3143_v61 = vpack.c.bf16 %v1038_v58, %v1035_v57 }
 0xe4c   :  { %1043 = vrot.lane.b32.xlu0 %v3143_v61, %s2726_s14 }
 0xe50   :  { %1168 = vrot.lane.b32.xlu0 %v3143_v61, %s2727_s19 }
 0xe54   :  { %1166 = vrot.lane.b32.xlu0 %v3143_v61, %s2728_s18 }
 0xebe   :  { %v1044_v62 = vpop.permute.xlu0 %1043 }
 0xebf   :  { %v1049_v63 = vsel %vm349_vm9, %v1044_v62, 0 }
 0xec0   :  { %2447 = vmatpush3.bf16.xpose.msra.mxu0 %v1049_v63 }
 0xec1   :  { %2452 = vmatprep.subr.bf16.mxu0 %v2724_v60 }
 0xec2   :  { %v1169_v29 = vpop.permute.xlu0 %1168 }
 0xec3   :  { %v1174_v31 = vsel %vm349_vm9, %v1169_v29, 0 }
 0xec6   :  { %v1167_v33 = vpop.permute.xlu0 %1166 }
 0xec7   :  { %2449 = vmatmul.mubr.msk.bf16.vlgmr.msra.gmra.mrb[12].mxu0 %vm349_vm9, %v3143_v61 }
 0xec8   :  { %2454 = vmatprep.mubr.msk.bf16.mxu0 %vm2725_vm8, %v2724_v60 }
 0xf9a   :  { %v1085_v0 = vpop.f32.mrb[12].mxu0 }
 0xf9b   :  { %v1092_v2 = vmul.f32 0.25, %v1085_v0  ;;  %v2450_v3 = vpop.f32.mrb[13].mxu0 }
 0xf9c   :  { %v1088_v5 = vpop.f32.mrb[14].mxu0 }
 0xf9d   :  { %v1093_v6 = vmul.f32 0.25, %v1088_v5  ;;  %v2451_v7 = vpop.f32.mrb[15].mxu0  ;;  %v1094_v8 = vadd.f32 %v1092_v2, %v2985_v38 }
 0xf9f   :  { %v1096_v32 = vsel %vm349_vm9, %v1094_v8, -inf  ;;  %v1095_v9 = vadd.f32 %v1093_v6, %v2987_v42  ;;  %v2570_v6 = vld [vmem:[%s3700_s9 + $0x18] sm:$0xff]  }
 0xfa0   :  { %1097 = vmax.xlane.f32.xlu1 %v1096_v32 }
 0xfa1   :  { %v1099_v10 = vsel %vm349_vm9, %v1095_v9, -inf }
 0xfa4   :  { %1100 = vmax.xlane.f32.xlu1 %v1099_v10 }
0x102d   :  { %v1098_v11 = vpop.xlane.xlu1 %1097 }
0x102e   :  { %v1102_v47 = vsub.f32 %v1094_v8, %v1098_v11 }
0x1030   :  { %v1104_v12 = vmul.f32 1.442695, %v1102_v47 }
0x1031   :  { %v1101_v13 = vpop.xlane.xlu1 %1100 }
0x1032   :  { %2613 = vpow2.f32 %v1104_v12  ;;  %v1103_v14 = vsub.f32 %v1095_v9, %v1101_v13 }
0x1034   :  { %v1106_v16 = vmul.f32 1.442695, %v1103_v14 }
0x1036   :  { %2615 = vpow2.f32 %v1106_v16 }
0x103c   :  { %v2614_v17 = vpop.eup %2613 }
0x103d   :  { %v1108_v19 = vsel %vm349_vm9, %v2614_v17, 0.0 }
0x103e   :  { %1109 = vadd.xlane.f32.xlu1 %v1108_v19  ;;  %v2228_v19 = vld [vmem:[%s3701_s27 + $0x1] ss:$0 sm:$0xff] }
0x1040   :  { %v2616_v20 = vpop.eup %2615 }
0x1041   :  { %v1111_v21 = vsel %vm349_vm9, %v2616_v20, 0.0 }
0x1042   :  { %1112 = vadd.xlane.f32.xlu1 %v1111_v21 }
0x1053   :  { %1119 = vrot.lane.b32.xlu1 %v3143_v61, %s2730_s17 }
0x10cb   :  { %v1110_v23 = vpop.xlane.xlu1 %1109 }
0x10cc   :  { %2617 = vrcp.f32 %v1110_v23 }
0x10cf   :  { %v1113_v1 = vpop.xlane.xlu1 %1112 }
0x10d0   :  { %2619 = vrcp.f32 %v1113_v1 }
0x10d3   :  { %v1120_v24 = vpop.permute.xlu1 %1119 }
0x10d4   :  { %2453 = vmatpush3.bf16.msra.mxu0 %v1120_v24 }
0x10d5   :  { %2458 = vmatprep.subr.bf16.mxu0 %v2724_v60 }
0x10d6   :  { %v2618_v25 = vpop.eup %2617 }
0x10d7   :  { %v1116_v4 = vmul.f32 %v2618_v25, %v2614_v17 }
0x10da   :  { %v2620_v26 = vpop.eup %2619 }
0x10db   :  { %v1117_v27 = vmul.f32 %v2620_v26, %v2616_v20 }
0x10dd   :  { %v1118_v30 = vpack.c.bf16 %v1117_v27, %v1116_v4 }
0x10df   :  { %2455 = vmatmul.mubr.msk.bf16.vlgmr.msra.gmra.mrb[16].mxu0 %vm349_vm9, %v1118_v30 }
0x10e0   :  { %2459 = vmatpush3.bf16.xpose.msra.mxu0 %v1174_v31  ;;  %2460 = vmatprep.mubr.msk.bf16.mxu0 %vm2725_vm8, %v2724_v60 }
0x10e1   :  { %2470 = vmatprep.subr.bf16.mxu0 %v2724_v60 }
0x10e7   :  { %2461 = vmatmul.mubr.msk.bf16.vlgmr.msra.gmra.mrb[20].mxu0 %vm349_vm9, %v1167_v33 }
0x10e8   :  { %2474 = vmatprep.mubr.msk.bf16.mxu0 %vm2725_vm8, %v2724_v60 }
0x11b2   :  { %v1159_v34 = vpop.f32.mrb[16].mxu0 }
0x11b3   :  { %v2456_v35 = vpop.f32.mrb[17].mxu0 }
0x11b4   :  { %v1162_v36 = vpop.f32.mrb[18].mxu0 }
0x11b5   :  { %v2457_v37 = vpop.f32.mrb[19].mxu0 }
0x11ba   :  { %v1210_v39 = vpop.f32.mrb[20].mxu0 }
0x11bb   :  { %v1217_v40 = vmul.f32 0.25, %v1210_v39  ;;  %v2462_v41 = vpop.f32.mrb[21].mxu0  ;;  %v2571_v39 = vld [vmem:[%s3702_s29 + $0x10] sm:$0xff]  }
0x11bc   :  { %v1213_v43 = vpop.f32.mrb[22].mxu0 }
0x11bd   :  { %v1218_v44 = vmul.f32 0.25, %v1213_v43  ;;  %v2463_v45 = vpop.f32.mrb[23].mxu0  ;;  %v1219_v22 = vadd.f32 %v1217_v40, %v2985_v38  ;;  %v2572_v40 = vld [vmem:[%s3702_s29 + $0x18] sm:$0xff]  }
0x11bf   :  { %v1221_v46 = vsel %vm349_vm9, %v1219_v22, -inf  ;;  %v1220_v48 = vadd.f32 %v1218_v44, %v2987_v42 }
0x11c0   :  { %1222 = vmax.xlane.f32.xlu0 %v1221_v46 }
0x11c1   :  { %v1224_v49 = vsel %vm349_vm9, %v1220_v48, -inf }
0x11c2   :  { %1225 = vmax.xlane.f32.xlu1 %v1224_v49  ;;  %v2231_v49 = vld [vmem:[%s3703_s25 + $0x1] ss:$0 sm:$0xff]  ;;  %s3709_s25 = sld [smem:[#allocation25_spill]] }
0x124d   :  { %v1223_v50 = vpop.xlane.xlu0 %1222 }
0x124e   :  { %v1227_v51 = vsub.f32 %v1219_v22, %v1223_v50 }
0x124f   :  { %v1226_v52 = vpop.xlane.xlu1 %1225 }
0x1250   :  { %v1229_v53 = vmul.f32 1.442695, %v1227_v51  ;;  %v1228_v54 = vsub.f32 %v1220_v48, %v1226_v52 }
0x1252   :  { %2621 = vpow2.f32 %v1229_v53  ;;  %v1231_v55 = vmul.f32 1.442695, %v1228_v54  ;;  %v2232_v54 = vld [vmem:[%s3704_s1 + $0x1] ss:$0 sm:$0xff] }
0x1254   :  { %2623 = vpow2.f32 %v1231_v55 }
0x125c   :  { %v2622_v56 = vpop.eup %2621 }
0x125d   :  { %v1233_v57 = vsel %vm349_vm9, %v2622_v56, 0.0 }
0x125e   :  { %v2624_v38 = vpop.eup %2623  ;;  %1234 = vadd.xlane.f32.xlu0 %v1233_v57 }
0x125f   :  { %v1236_v58 = vsel %vm349_vm9, %v2624_v38, 0.0 }
0x1262   :  { %1237 = vadd.xlane.f32.xlu0 %v1236_v58  ;;  %v2573_v58 = vld [vmem:[%s3705_s13 + $0x40] sm:$0xff]  }
0x1278   :  { %1244 = vrot.lane.b32.xlu0 %v3143_v61, %s2731_s11  ;;  %v2569_v61 = vld [vmem:[%s3700_s9 + $0x10] sm:$0xff]  }
0x1279   :  { %2471 = vmatpush3.bf16.msra.mxu0 %v2569_v61 }
0x127a   :  { %2472 = vmatprep.subr.bf16.mxu0 %v2724_v60 }
0x127d   :  { %2473 = vmatpush3.bf16.msra.mxu0 %v2570_v6 }
0x127e   :  { %2486 = vmatprep.subr.bf16.mxu0 %v2724_v60 }
0x12eb   :  { %v1235_v42 = vpop.xlane.xlu0 %1234 }
0x12ec   :  { %2625 = vrcp.f32 %v1235_v42  ;;  %v2574_v42 = vld [vmem:[%s3705_s13 + $0x48] sm:$0xff]  }
0x12ef   :  { %v1238_v59 = vpop.xlane.xlu0 %1237 }
0x12f0   :  { %2627 = vrcp.f32 %v1238_v59  ;;  %v2575_v59 = vld [vmem:[%s3705_s13 + $0x50] sm:$0xff]  }
0x12f3   :  { %v1245_v62 = vpop.permute.xlu0 %1244 }
0x12f4   :  { %2465 = vmatpush3.bf16.msra.mxu1 %v1245_v62  ;;  %v2576_v62 = vld [vmem:[%s3705_s13 + $0x58] sm:$0xff]  }
0x12f5   :  { %2478 = vmatprep.subr.bf16.mxu1 %v2724_v60 }
0x12f6   :  { %v2626_v63 = vpop.eup %2625 }
0x12f7   :  { %v1241_v2 = vmul.f32 %v2626_v63, %v2622_v56  ;;  %v2577_v63 = vld [vmem:[%s3705_s13 + $0x60] sm:$0xff]  }
0x12fa   :  { %v2628_v0 = vpop.eup %2627 }
0x12fb   :  { %v1242_v3 = vmul.f32 %v2628_v0, %v2624_v38  ;;  %v2578_v0 = vld [vmem:[%s3705_s13 + $0x68] sm:$0xff]  }
0x12fd   :  { %v1243_v5 = vpack.c.bf16 %v1242_v3, %v1241_v2  ;;  %v2579_v2 = vld [vmem:[%s3705_s13 + $0x70] sm:$0xff]   ;;  %v2580_v3 = vld [vmem:[%s3705_s13 + $0x78] sm:$0xff]  }
0x12ff   :  { %2467 = vmatmul.mubr.msk.bf16.vlgmr.msra.gmra.mrb[24].mxu1 %vm349_vm9, %v1243_v5  ;;  %v2238_v5 = vld [vmem:[%s3706_s3 + $0x1] ss:$0 sm:$0xff] }
0x1300   :  { %2482 = vmatprep.mubr.msk.bf16.mxu1 %vm2725_vm8, %v2724_v60  ;;  %2479 = vmatpush3.bf16.msra.mxu1 %v2571_v39 }
0x1301   :  { %2480 = vmatprep.subr.bf16.mxu1 %v2724_v60 }
0x1304   :  { %2481 = vmatpush3.bf16.msra.mxu1 %v2572_v40 }
0x13d2   :  { %v1284_v7 = vpop.f32.mrb[24].mxu1 }
0x13d3   :  { %v2468_v8 = vpop.f32.mrb[25].mxu1 }
0x13d4   :  { %v1287_v32 = vpop.f32.mrb[26].mxu1 }
0x13d5   :  { %v2546_v9 = vpack.i.bf16 %v1287_v32, %v1284_v7  ;;  %v2469_v10 = vpop.f32.mrb[27].mxu1 }
0x13d7   :  { %2547 = vrot.lane.b32.xlu1 %v2546_v9, %s2732_s20 }
0x1449   :  { %v2548_v11 = vpop.permute.xlu1 %2547 }
0x144a   :  { %v2550_v47 = vunpack.i.h.bf16 %v2548_v11  ;;  %v2549_v12 = vunpack.i.l.bf16 %v2548_v11 }
0x144c   :  { %v1300_v13 = vsel %vm349_vm9, %v1162_v36, %v2550_v47  ;;  %v1299_v14 = vsel %vm349_vm9, %v1159_v34, %v2549_v12 }
0x144d   :  { %v1301_v16 = vpack.c.bf16 %v1300_v13, %v1299_v14 }
0x144f   :  { %2475 = vmatmul.mubr.msk.bf16.vlgmr.msra.gmra.mrb[24].mxu0 %vm233_vm7, %v1301_v16 }
0x1450   :  { %2502 = vmatprep.mubr.msk.bf16.mxu0 %vm2725_vm8, %v2724_v60  ;;  %2487 = vmatpush3.bf16.msra.mxu0 %v2573_v58 }
0x1451   :  { %2488 = vmatprep.subr.bf16.mxu0 %v2724_v60 }
0x1454   :  { %2489 = vmatpush3.bf16.msra.mxu0 %v2574_v42 }
0x1455   :  { %2490 = vmatprep.subr.bf16.mxu0 %v2724_v60 }
0x1458   :  { %2491 = vmatpush3.bf16.msra.mxu0 %v2575_v59  ;;  %v1675_v59 = vld [vmem:[%s3697_s24 + $0x10] sm:$0xff] }
0x1459   :  { %2492 = vmatprep.subr.bf16.mxu0 %v2724_v60 }
0x145c   :  { %2493 = vmatpush3.bf16.msra.mxu0 %v2576_v62  ;;  %v1676_v62 = vld [vmem:[%s3697_s24 + $0x18] sm:$0xff] }
0x145d   :  { %2494 = vmatprep.subr.bf16.mxu0 %v2724_v60 }
0x1460   :  { %2495 = vmatpush3.bf16.msra.mxu0 %v2577_v63  ;;  %v1707_v63 = vld [vmem:[%s3697_s24 + $0x110] sm:$0xff] }
0x1461   :  { %2496 = vmatprep.subr.bf16.mxu0 %v2724_v60 }
0x1464   :  { %2497 = vmatpush3.bf16.msra.mxu0 %v2578_v0 }
0x1465   :  { %2498 = vmatprep.subr.bf16.mxu0 %v2724_v60 }
0x1468   :  { %2499 = vmatpush3.bf16.msra.mxu0 %v2579_v2  ;;  %v1708_v2 = vld [vmem:[%s3697_s24 + $0x118] sm:$0xff] }
0x1469   :  { %2500 = vmatprep.subr.bf16.mxu0 %v2724_v60 }
0x146c   :  { %2501 = vmatpush3.bf16.msra.mxu0 %v2580_v3  ;;  %v1738_v3 = vpack.c.bf16 %v1676_v62, %v1675_v59  ;;  %v1731_v62 = vld [vmem:[%s3697_s24 + $0x1d0] sm:$0xff] }
0x1522   :  { %v1356_v17 = vpop.f32.mrb[24].mxu0 }
0x1523   :  { %v1363_v20 = vadd.f32 %v1356_v17, %v3110_v15  ;;  %v2476_v21 = vpop.f32.mrb[25].mxu0 }
0x1524   :  { %v1359_v23 = vpop.f32.mrb[26].mxu0 }
0x1525   :  { %v3204_v1 = vadd.f32 %v2228_v19, %v1363_v20  ;;  %v1364_v24 = vadd.f32 %v1359_v23, %v3113_v18  ;;  %v2477_v25 = vpop.f32.mrb[27].mxu0 }
0x1527   :  { %v3207_v26 = vadd.f32 %v2228_v19, %v1364_v24  ;;  %v1379_v4 = vsel %vm233_vm7, %v3204_v1, 0.0 }
0x1528   :  { %1380 = vadd.xlane.f32.xlu1 %v1379_v4 }
0x1529   :  { %v1382_v27 = vsel %vm233_vm7, %v3207_v26, 0.0 }
0x152a   :  { %1383 = vadd.xlane.f32.xlu0 %v1382_v27 }
0x15b5   :  { %v1381_v29 = vpop.xlane.xlu1 %1380 }
0x15b6   :  { %v1385_v30 = vmul.f32 0.03125, %v1381_v29 }
0x15b7   :  { %v1384_v15 = vpop.xlane.xlu0 %1383 }
0x15b8   :  { %v1387_v31 = vsub.f32 %v3204_v1, %v1385_v30  ;;  %v1386_v33 = vmul.f32 0.03125, %v1384_v15 }
0x15ba   :  { %v1388_v34 = vsub.f32 %v3207_v26, %v1386_v33  ;;  %v1389_v18 = vmul.f32 %v1387_v31, %v1387_v31  ;;  %v2267_v33 = vld [vmem:[%s3707_s4 + $0x1] ss:$0 sm:$0xff] }
0x15bc   :  { %v1391_v35 = vsel %vm233_vm7, %v1389_v18, 0.0  ;;  %v1390_v36 = vmul.f32 %v1388_v34, %v1388_v34 }
0x15bd   :  { %1392 = vadd.xlane.f32.xlu0 %v1391_v35 }
0x15be   :  { %v1394_v37 = vsel %vm233_vm7, %v1390_v36, 0.0 }
0x15bf   :  { %1395 = vadd.xlane.f32.xlu1 %v1394_v37 }
0x164a   :  { %v1393_v41 = vpop.xlane.xlu0 %1392 }
0x164b   :  { %v1397_v43 = vmul.f32 0.03125, %v1393_v41 }
0x164c   :  { %v1396_v44 = vpop.xlane.xlu1 %1395 }
0x164d   :  { %v1399_v45 = vadd.f32 1e-05, %v1397_v43  ;;  %v1398_v22 = vmul.f32 0.03125, %v1396_v44  ;;  %v1721_v44 = vld [vmem:[%s3697_s24 + $0x180] sm:$0xff] }
0x164f   :  { %2629 = vrsqrt.f32 %v1399_v45  ;;  %v1400_v46 = vadd.f32 1e-05, %v1398_v22  ;;  %v1722_v22 = vld [vmem:[%s3697_s24 + $0x188] sm:$0xff] }
0x1651   :  { %2631 = vrsqrt.f32 %v1400_v46  ;;  %v1673_v46 = vld [vmem:[%s3697_s24] sm:$0xff] }
0x1659   :  { %v2630_v48 = vpop.eup %2629 }
0x165a   :  { %v1403_v50 = vmul.f32 %v2630_v48, %v1387_v31  ;;  %v1674_v48 = vld [vmem:[%s3697_s24 + $0x8] sm:$0xff] }
0x165b   :  { %v2632_v51 = vpop.eup %2631 }
0x165c   :  { %v1411_v52 = vmul.f32 %v2231_v49, %v1403_v50  ;;  %v1404_v53 = vmul.f32 %v2632_v51, %v1388_v34  ;;  %v1737_v50 = vpack.c.bf16 %v1674_v48, %v1673_v46  ;;  %v1705_v51 = vld [vmem:[%s3697_s24 + $0x100] sm:$0xff]  ;;  %v1714_v46 = vld [vmem:[%s3697_s24 + $0x148] sm:$0xff] }
0x165e   :  { %v1412_v55 = vmul.f32 %v2231_v49, %v1404_v53  ;;  %v1419_v56 = vadd.f32 %v2232_v54, %v1411_v52  ;;  %v1761_v49 = vpack.c.bf16 %v1722_v22, %v1721_v44  ;;  %v1706_v52 = vld [vmem:[%s3697_s24 + $0x108] sm:$0xff]  ;;  %v1691_v53 = vld [vmem:[%s3697_s24 + $0x90] sm:$0xff]  ;;  %v1681_v44 = vld [vmem:[%s3697_s24 + $0x40] sm:$0xff] }
0x165f   :  { %v1713_v22 = vld [vmem:[%s3697_s24 + $0x140] sm:$0xff] }
0x1660   :  { %v1420_v57 = vadd.f32 %v2232_v54, %v1412_v55  ;;  %v1753_v54 = vpack.c.bf16 %v1706_v52, %v1705_v51  ;;  %v1692_v55 = vld [vmem:[%s3697_s24 + $0x98] sm:$0xff]  ;;  %2514 = vmatprep.subr.msk.bf16.mxu0 %vm233_vm7, %v1761_v49  ;;  %v1757_v49 = vpack.c.bf16 %v1714_v46, %v1713_v22 }
0x1661   :  { %v1746_v58 = vpack.c.bf16 %v1692_v55, %v1691_v53 }
0x1662   :  { %v1421_v38 = vpack.c.bf16 %v1420_v57, %v1419_v56  ;;  %v1723_v56 = vld [vmem:[%s3697_s24 + $0x190] sm:$0xff]  ;;  %v1724_v57 = vld [vmem:[%s3697_s24 + $0x198] sm:$0xff]  ;;  %v1821_v0 = vsel %vm233_vm7, %v1753_v54, 0  ;;  %v1833_v51 = vsel %vm233_vm7, %v1757_v49, 0  ;;  %v2268_v49 = vld [vmem:[%s3708_s26] ss:$0 sm:$0xff] }
0x1663   :  { %v1762_v42 = vpack.c.bf16 %v1724_v57, %v1723_v56 }
0x1664   :  { %2483 = vmatmul.mubr.msk.bf16.vlgmr.msra.gmra.mrb[28].mxu1 %vm233_vm7, %v1421_v38  ;;  %v1773_v38 = vsel %vm233_vm7, %v1737_v50, 0 }
0x1737   :  { %v1484_v61 = vpop.f32.mrb[28].mxu1 }
0x1738   :  { %v1485_v6 = vadd.f32 %v2238_v5, %v1484_v61  ;;  %v2484_v7 = vpop.f32.mrb[29].mxu1  ;;  %v1693_v61 = vld [vmem:[%s3697_s24 + $0xa0] sm:$0xff] }
0x1739   :  { %v1487_v8 = vpop.f32.mrb[30].mxu1  ;;  %v1725_v7 = vld [vmem:[%s3697_s24 + $0x1a0] sm:$0xff] }
0x173a   :  { %v1493_v32 = vmul.f32 %v1485_v6, %v1485_v6  ;;  %v1488_v9 = vadd.f32 %v2238_v5, %v1487_v8  ;;  %v2485_v10 = vpop.f32.mrb[31].mxu1  ;;  %v1491_v25 = vmul.f32 0.5, %v1485_v6  ;;  %v1754_v5 = vpack.c.bf16 %v1708_v2, %v1707_v63  ;;  %v1726_v8 = vld [vmem:[%s3697_s24 + $0x1a8] sm:$0xff]  ;;  %v1683_v2 = vld [vmem:[%s3697_s24 + $0x50] sm:$0xff] }
0x173c   :  { %v1495_v11 = vmul.f32 %v1493_v32, %v1485_v6  ;;  %v1494_v47 = vmul.f32 %v1488_v9, %v1488_v9  ;;  %v1492_v4 = vmul.f32 0.5, %v1488_v9  ;;  %v1776_v32 = vsel %vm233_vm7, %v1738_v3, 0  ;;  %v1684_v3 = vld [vmem:[%s3697_s24 + $0x58] sm:$0xff] }
0x173d   :  { %v1824_v10 = vsel %vm233_vm7, %v1754_v5, 0 }
0x173e   :  { %v1497_v12 = vmul.f32 0.044715, %v1495_v11  ;;  %v1496_v13 = vmul.f32 %v1494_v47, %v1488_v9  ;;  %v1763_v11 = vpack.c.bf16 %v1726_v8, %v1725_v7  ;;  %v1677_v47 = vld [vmem:[%s3697_s24 + $0x20] sm:$0xff]  ;;  %v1716_v7 = vld [vmem:[%s3697_s24 + $0x158] sm:$0xff] }
0x1740   :  { %v1499_v14 = vadd.f32 %v1497_v12, %v1485_v6  ;;  %v1498_v16 = vmul.f32 0.044715, %v1496_v13  ;;  %v1694_v6 = vld [vmem:[%s3697_s24 + $0xa8] sm:$0xff]  ;;  %v1709_v13 = vld [vmem:[%s3697_s24 + $0x120] sm:$0xff] }
0x1741   :  { %v1678_v12 = vld [vmem:[%s3697_s24 + $0x28] sm:$0xff] }
0x1742   :  { %v1501_v17 = vmul.f32 0.7978846, %v1499_v14  ;;  %v1500_v19 = vadd.f32 %v1498_v16, %v1488_v9  ;;  %v1747_v9 = vpack.c.bf16 %v1694_v6, %v1693_v61  ;;  %v1710_v14 = vld [vmem:[%s3697_s24 + $0x128] sm:$0xff]  ;;  %v1739_v16 = vpack.c.bf16 %v1678_v12, %v1677_v47  ;;  %v1715_v6 = vld [vmem:[%s3697_s24 + $0x150] sm:$0xff]  ;;  %v1733_v47 = vld [vmem:[%s3697_s24 + $0x1e0] sm:$0xff] }
0x1743   :  { %v1742_v61 = vpack.c.bf16 %v1684_v3, %v1683_v2  ;;  %v1758_v8 = vpack.c.bf16 %v1716_v7, %v1715_v6 }
0x1744   :  { %2633 = vtanh.f32 %v1501_v17  ;;  %v1502_v20 = vmul.f32 0.7978846, %v1500_v19  ;;  %v1755_v17 = vpack.c.bf16 %v1710_v14, %v1709_v13  ;;  %v1695_v19 = vld [vmem:[%s3697_s24 + $0xb0] sm:$0xff]  ;;  %v1734_v13 = vld [vmem:[%s3697_s24 + $0x1e8] sm:$0xff]  ;;  %v1685_v14 = vld [vmem:[%s3697_s24 + $0x60] sm:$0xff] }
0x1746   :  { %2635 = vtanh.f32 %v1502_v20  ;;  %v1696_v20 = vld [vmem:[%s3697_s24 + $0xb8] sm:$0xff] }
0x174e   :  { %v2634_v21 = vpop.eup %2633 }
0x174f   :  { %v1505_v23 = vadd.f32 1.0, %v2634_v21  ;;  %v1727_v21 = vld [vmem:[%s3697_s24 + $0x1b0] sm:$0xff] }
0x1750   :  { %v2636_v24 = vpop.eup %2635 }
0x1751   :  { %v1506_v27 = vadd.f32 1.0, %v2636_v24  ;;  %v1507_v29 = vmul.f32 %v1505_v23, %v1491_v25  ;;  %v1728_v23 = vld [vmem:[%s3697_s24 + $0x1b8] sm:$0xff]  ;;  %v1779_v24 = vsel %vm233_vm7, %v1739_v16, 0  ;;  %v1748_v25 = vpack.c.bf16 %v1696_v20, %v1695_v19  ;;  %v1686_v16 = vld [vmem:[%s3697_s24 + $0x68] sm:$0xff]  ;;  %v1717_v20 = vld [vmem:[%s3697_s24 + $0x160] sm:$0xff] }
0x1752   :  { %v1743_v19 = vpack.c.bf16 %v1686_v16, %v1685_v14 }
0x1753   :  { %v1508_v30 = vmul.f32 %v1506_v27, %v1492_v4  ;;  %v1827_v4 = vsel %vm233_vm7, %v1755_v17, 0  ;;  %v1764_v27 = vpack.c.bf16 %v1728_v23, %v1727_v21  ;;  %v1767_v17 = vpack.c.bf16 %v1734_v13, %v1733_v47  ;;  %v1718_v21 = vld [vmem:[%s3697_s24 + $0x168] sm:$0xff] }
0x1754   :  { %v1759_v23 = vpack.c.bf16 %v1718_v21, %v1717_v20  ;;  %v1975_v20 = vadd.s32 256, %v2978_v28 }
0x1755   :  { %v1509_v15 = vpack.c.bf16 %v1508_v30, %v1507_v29  ;;  %v1679_v29 = vld [vmem:[%s3697_s24 + $0x30] sm:$0xff]  ;;  %v1680_v30 = vld [vmem:[%s3697_s24 + $0x38] sm:$0xff] }
0x1757   :  { %2503 = vmatmul.mubr.bf16.vlgmr.msra.gmra.mrb[28].mxu0 %v1509_v15  ;;  %v1711_v15 = vld [vmem:[%s3697_s24 + $0x130] sm:$0xff] }
0x1758   :  { %2353 = vmatpush3.bf16.xpose.msra.mxu0 %v1821_v0  ;;  %v1732_v0 = vld [vmem:[%s3697_s24 + $0x1d8] sm:$0xff] }
0x1759   :  { %2515 = vmatprep.subr.msk.bf16.mxu0 %vm233_vm7, %v1762_v42  ;;  %v1766_v5 = vpack.c.bf16 %v1732_v0, %v1731_v62 }
0x1760   :  { %2355 = vmatpush3.bf16.xpose.msra.mxu0 %v1824_v10  ;;  %v1701_v10 = vld [vmem:[%s3697_s24 + $0xe0] sm:$0xff] }
0x1761   :  { %2516 = vmatprep.subr.msk.bf16.mxu0 %vm233_vm7, %v1763_v11  ;;  %v1702_v11 = vld [vmem:[%s3697_s24 + $0xe8] sm:$0xff] }
0x1762   :  { %v1751_v12 = vpack.c.bf16 %v1702_v11, %v1701_v10 }
0x1768   :  { %2357 = vmatpush3.bf16.xpose.msra.mxu0 %v1827_v4  ;;  %v1703_v4 = vld [vmem:[%s3697_s24 + $0xf0] sm:$0xff] }
0x1769   :  { %2517 = vmatprep.subr.msk.bf16.mxu0 %vm233_vm7, %v1764_v27  ;;  %v1704_v27 = vld [vmem:[%s3697_s24 + $0xf8] sm:$0xff] }
0x182a   :  { %v1609_v31 = vpop.f32.mrb[28].mxu0 }
0x182b   :  { %v1616_v34 = vadd.f32 %v1609_v31, %v3204_v1  ;;  %v2504_v18 = vpop.f32.mrb[29].mxu0  ;;  %v1689_v1 = vld [vmem:[%s3697_s24 + $0x80] sm:$0xff]  ;;  %v1712_v31 = vld [vmem:[%s3697_s24 + $0x138] sm:$0xff] }
0x182c   :  { %v1612_v35 = vpop.f32.mrb[30].mxu0  ;;  %v1697_v18 = vld [vmem:[%s3697_s24 + $0xc0] sm:$0xff] }
0x182d   :  { %v1617_v36 = vadd.f32 %v1612_v35, %v3207_v26  ;;  %v2505_v37 = vpop.f32.mrb[31].mxu0  ;;  %v3270_v39 = vadd.f32 %v2267_v33, %v1616_v34  ;;  %v1690_v26 = vld [vmem:[%s3697_s24 + $0x88] sm:$0xff]  ;;  %v1756_v34 = vpack.c.bf16 %v1712_v31, %v1711_v15  ;;  %v1736_v15 = vld [vmem:[%s3697_s24 + $0x1f8] sm:$0xff]  ;;  %v1687_v31 = vld [vmem:[%s3697_s24 + $0x70] sm:$0xff] }
0x182e   :  { %v1745_v45 = vpack.c.bf16 %v1690_v26, %v1689_v1  ;;  %v1698_v35 = vld [vmem:[%s3697_s24 + $0xc8] sm:$0xff] }
0x182f   :  { %v1630_v40 = vsel %vm233_vm7, %v3270_v39, 0.0  ;;  %v3274_v41 = vadd.f32 %v2267_v33, %v1617_v36  ;;  %v1740_v33 = vpack.c.bf16 %v1680_v30, %v1679_v29  ;;  %v1729_v36 = vld [vmem:[%s3697_s24 + $0x1c0] sm:$0xff]  ;;  %v1730_v37 = vld [vmem:[%s3697_s24 + $0x1c8] sm:$0xff]  ;;  %v1830_v1 = vsel %vm233_vm7, %v1756_v34, 0  ;;  %v1735_v29 = vld [vmem:[%s3697_s24 + $0x1f0] sm:$0xff] }
0x1830   :  { %1631 = vadd.xlane.f32.xlu0 %v1630_v40  ;;  %2506 = vmatprep.subr.msk.bf16.mxu1 %vm233_vm7, %v1745_v45  ;;  %v1765_v26 = vpack.c.bf16 %v1730_v37, %v1729_v36  ;;  %v1682_v45 = vld [vmem:[%s3697_s24 + $0x48] sm:$0xff]  ;;  %v1752_v30 = vpack.c.bf16 %v1704_v27, %v1703_v4  ;;  %v1768_v34 = vpack.c.bf16 %v1736_v15, %v1735_v29  ;;  %v1720_v36 = vld [vmem:[%s3697_s24 + $0x178] sm:$0xff] }
0x1831   :  { %v1633_v43 = vsel %vm233_vm7, %v3274_v41, 0.0  ;;  %2335 = vmatpush3.bf16.xpose.msra.mxu1 %v1773_v38  ;;  %v1782_v40 = vsel %vm233_vm7, %v1740_v33, 0  ;;  %2359 = vmatpush3.bf16.xpose.msra.mxu0 %v1830_v1  ;;  %v1741_v48 = vpack.c.bf16 %v1682_v45, %v1681_v44  ;;  %v1688_v33 = vld [vmem:[%s3697_s24 + $0x78] sm:$0xff] }
0x1832   :  { %1634 = vadd.xlane.f32.xlu1 %v1633_v43  ;;  %2507 = vmatprep.subr.msk.bf16.mxu1 %vm233_vm7, %v1746_v58  ;;  %v1749_v43 = vpack.c.bf16 %v1698_v35, %v1697_v18  ;;  %v1744_v18 = vpack.c.bf16 %v1688_v33, %v1687_v31  ;;  %v1719_v35 = vld [vmem:[%s3697_s24 + $0x170] sm:$0xff] }
0x1833   :  { %2518 = vmatprep.subr.msk.bf16.mxu0 %vm233_vm7, %v1765_v26  ;;  %v1785_v50 = vsel %vm233_vm7, %v1741_v48, 0  ;;  %v1760_v37 = vpack.c.bf16 %v1720_v36, %v1719_v35 }
0x1839   :  { %2337 = vmatpush3.bf16.xpose.msra.mxu1 %v1776_v32  ;;  %2361 = vmatpush3.bf16.xpose.msra.mxu0 %v1833_v51  ;;  %v1788_v32 = vsel %vm233_vm7, %v1742_v61, 0 }
0x183a   :  { %2508 = vmatprep.subr.msk.bf16.mxu1 %vm233_vm7, %v1747_v9  ;;  %2519 = vmatprep.subr.msk.bf16.mxu0 %vm233_vm7, %v1766_v5  ;;  %v1836_v9 = vsel %vm233_vm7, %v1758_v8, 0 }
0x1841   :  { %2339 = vmatpush3.bf16.xpose.msra.mxu1 %v1779_v24  ;;  %2363 = vmatpush3.bf16.xpose.msra.mxu0 %v1836_v9  ;;  %v1791_v24 = vsel %vm233_vm7, %v1743_v19, 0  ;;  %v3567_v9 = vld [vmem:[%s3710_s2] sm:$0xff]  ;;  %v1974_v19 = vadd.s32 128, %v2978_v28 }
0x1842   :  { %2509 = vmatprep.subr.msk.bf16.mxu1 %vm233_vm7, %v1748_v25  ;;  %2520 = vmatprep.subr.msk.bf16.mxu0 %vm233_vm7, %v1767_v17  ;;  %v1839_v25 = vsel %vm233_vm7, %v1759_v23, 0  ;;  %vm1970_vm3 = vcmp.gt.s32.totalorder %v3567_v9, 0  ;;  %vm1964_vm12 = vcmp.ge.s32.totalorder %v3567_v9, 0 }
0x1843   :  { %v1971_v11 = vsel %vm1970_vm3, %v3567_v9, 0 }
0x1849   :  { %2341 = vmatpush3.bf16.xpose.msra.mxu1 %v1782_v40  ;;  %2365 = vmatpush3.bf16.xpose.msra.mxu0 %v1839_v25  ;;  %v1794_v40 = vsel %vm233_vm7, %v1744_v18, 0  ;;  %v1976_v18 = vadd.s32 384, %v2978_v28 }
0x184a   :  { %2510 = vmatprep.subr.msk.bf16.mxu1 %vm233_vm7, %v1749_v43  ;;  %2521 = vmatprep.subr.msk.bf16.mxu0 %vm233_vm7, %v1768_v34  ;;  %v1842_v43 = vsel %vm233_vm7, %v1760_v37, 0 }
0x1851   :  { %2343 = vmatpush3.bf16.xpose.msra.mxu1 %v1785_v50  ;;  %2367 = vmatpush3.bf16.xpose.msra.mxu0 %v1842_v43 }
0x18bd   :  { %v1632_v52 = vpop.xlane.xlu0 %1631 }
0x18be   :  { %v1636_v53 = vmul.f32 0.03125, %v1632_v52 }
0x18bf   :  { %v1635_v54 = vpop.xlane.xlu1 %1634 }
0x18c0   :  { %v3419_v55 = vsub.f32 %v3270_v39, %v1636_v53  ;;  %v1637_v56 = vmul.f32 0.03125, %v1635_v54  ;;  %v1699_v39 = vld [vmem:[%s3697_s24 + $0xd0] sm:$0xff]  ;;  %v2269_v54 = vld [vmem:[%s3709_s25] ss:$0 sm:$0xff] }
0x18c2   :  { %v3422_v57 = vsub.f32 %v3274_v41, %v1637_v56  ;;  %v1640_v38 = vmul.f32 %v3419_v55, %v3419_v55  ;;  %v1700_v41 = vld [vmem:[%s3697_s24 + $0xd8] sm:$0xff] }
0x18c3   :  { %v1750_v63 = vpack.c.bf16 %v1700_v41, %v1699_v39 }
0x18c4   :  { %v1642_v58 = vsel %vm233_vm7, %v1640_v38, 0.0  ;;  %v1641_v42 = vmul.f32 %v3422_v57, %v3422_v57 }
0x18c5   :  { %1643 = vadd.xlane.f32.xlu0 %v1642_v58  ;;  %2511 = vmatprep.subr.msk.bf16.mxu1 %vm233_vm7, %v1750_v63 }
0x18c6   :  { %v1645_v59 = vsel %vm233_vm7, %v1641_v42, 0.0  ;;  %2345 = vmatpush3.bf16.xpose.msra.mxu1 %v1788_v32  ;;  %v3561_v32 = vld [vmem:[%s3710_s2 + $0x8] sm:$0xff] }
0x18c7   :  { %1646 = vadd.xlane.f32.xlu1 %v1645_v59  ;;  %2512 = vmatprep.subr.msk.bf16.mxu1 %vm233_vm7, %v1751_v12  ;;  %vm1972_vm2 = vcmp.gt.s32.totalorder %v3561_v32, 0  ;;  %vm1965_vm13 = vcmp.ge.s32.totalorder %v3561_v32, 0 }
0x18c8   :  { %v1973_v10 = vsel %vm1972_vm2, %v3561_v32, 0 }
0x18ce   :  { %2347 = vmatpush3.bf16.xpose.msra.mxu1 %v1791_v24 }
0x18cf   :  { %2513 = vmatprep.subr.msk.bf16.mxu1 %vm233_vm7, %v1752_v30 }
0x18d6   :  { %2349 = vmatpush3.bf16.xpose.msra.mxu1 %v1794_v40 }
0x1952   :  { %v1644_v1 = vpop.xlane.xlu0 %1643 }
0x1953   :  { %v1648_v26 = vmul.f32 0.03125, %v1644_v1 }
0x1954   :  { %v1647_v44 = vpop.xlane.xlu1 %1646 }
0x1955   :  { %v1650_v45 = vadd.f32 1e-05, %v1648_v26  ;;  %v1649_v22 = vmul.f32 0.03125, %v1647_v44 }
0x1957   :  { %2637 = vrsqrt.f32 %v1650_v45  ;;  %v1651_v46 = vadd.f32 1e-05, %v1649_v22 }
0x1959   :  { %2639 = vrsqrt.f32 %v1651_v46 }
0x1961   :  { %v2638_v48 = vpop.eup %2637 }
0x1962   :  { %v1654_v50 = vmul.f32 %v2638_v48, %v3419_v55  ;;  %v2733_v55 = vmov 0  }
0x1963   :  { %v2640_v51 = vpop.eup %2639  ;;  %2552 = vset.pattern.permute.xlu1 %v2733_v55  ;;  %2551 = vset.pattern.permute.xlu0 %v2733_v55 }
0x1964   :  { %v1655_v52 = vmul.f32 %v2640_v51, %v3422_v57  ;;  %v1662_v53 = vmul.f32 %v2268_v49, %v1654_v50 }
0x1966   :  { %v1663_v56 = vmul.f32 %v2268_v49, %v1655_v52  ;;  %v1670_v38 = vadd.f32 %v2269_v54, %v1662_v53 }
0x1968   :  { %v1671_v58 = vadd.f32 %v2269_v54, %v1663_v56 }
0x196a   :  { %v1672_v42 = vpack.c.bf16 %v1671_v58, %v1670_v38 }
0x196c   :  { %2350 = vmatprep.mubr.msk.bf16.mxu1 %vm233_vm7, %v1672_v42  ;;  %2368 = vmatprep.mubr.msk.bf16.mxu0 %vm233_vm7, %v1672_v42 }
0x196d   :  { %2351 = vmatmul.mubr.msk.bf16.vlgmr.msra.gmra.mrb[32].mxu1 %vm233_vm7, %v1672_v42  ;;  %2369 = vmatmul.mubr.msk.bf16.vlgmr.msra.gmra.mrb[32].mxu0 %vm233_vm7, %v1672_v42 }
0x1a40   :  { %v3526_v57 = vpop.f32.mrb[32].mxu1  ;;  %v3528_v59 = vpop.f32.mrb[32].mxu0 }
0x1a41   :  { %1954 = vst [vmem:[#allocation4] sm:$0xff] %v3526_v57  ;;  %1956 = vst [vmem:[#allocation4 + $0x10] sm:$0xff] %v3528_v59  ;;  %v3532_v39 = vpop.f32.mrb[33].mxu1  ;;  %v3534_v41 = vpop.f32.mrb[33].mxu0  ;;  %v2025_v62 = vmax.f32 %v3526_v57, %v3528_v59 }
0x1a42   :  { %1955 = vst [vmem:[#allocation4 + $0x8] sm:$0xff] %v3532_v39  ;;  %1957 = vst [vmem:[#allocation4 + $0x18] sm:$0xff] %v3534_v41  ;;  %v3540_v63 = vpop.f32.mrb[34].mxu1  ;;  %v3542_v0 = vpop.f32.mrb[34].mxu0  ;;  %v2026_v2 = vmax.f32 %v3532_v39, %v3534_v41 }
0x1a43   :  { %1958 = vst [vmem:[#allocation4 + $0x20] sm:$0xff] %v3540_v63  ;;  %1960 = vst [vmem:[#allocation4 + $0x30] sm:$0xff] %v3542_v0  ;;  %v3548_v3 = vpop.f32.mrb[35].mxu1  ;;  %v3550_v5 = vpop.f32.mrb[35].mxu0  ;;  %v2030_v61 = vmax.f32 %v3540_v63, %v3542_v0 }
0x1a44   :  { %1959 = vst [vmem:[#allocation4 + $0x28] sm:$0xff] %v3548_v3  ;;  %1961 = vst [vmem:[#allocation4 + $0x38] sm:$0xff] %v3550_v5  ;;  %v2027_v6 = vmax.f32 %v2025_v62, %v2026_v2  ;;  %v2031_v7 = vmax.f32 %v3548_v3, %v3550_v5 }
0x1a46   :  { %2028 = vmax.xlane.f32.xlu0 %v2027_v6  ;;  %v2032_v8 = vmax.f32 %v2030_v61, %v2031_v7 }
0x1a48   :  { %2033 = vmax.xlane.f32.xlu1 %v2032_v8 }
0x1a59   :  { %1981 = vperm.xlu1 %2552, %v1973_v10  }
0x1a5c   :  { %1978 = vperm.xlu0 %2551, %v1971_v11  }
0x1ad3   :  { %v3572_v47 = vpop.xlane.xlu0 %2028 }
0x1ad4   :  { %v2035_v12 = vsub.f32 %v3526_v57, %v3572_v47  ;;  %v2036_v13 = vsub.f32 %v3532_v39, %v3572_v47  ;;  %v2037_v14 = vsub.f32 %v3528_v59, %v3572_v47  ;;  %v2038_v16 = vsub.f32 %v3534_v41, %v3572_v47 }
0x1ad5   :  { %v3582_v17 = vpop.xlane.xlu1 %2033 }
0x1ad6   :  { %v2043_v21 = vmul.f32 1.442695, %v2035_v12  ;;  %v2045_v23 = vmul.f32 1.442695, %v2036_v13  ;;  %v2047_v24 = vmul.f32 1.442695, %v2037_v14  ;;  %v2039_v25 = vsub.f32 %v3540_v63, %v3582_v17 }
0x1ad7   :  { %v2049_v4 = vmul.f32 1.442695, %v2038_v16  ;;  %v2040_v27 = vsub.f32 %v3548_v3, %v3582_v17  ;;  %v2041_v29 = vsub.f32 %v3542_v0, %v3582_v17  ;;  %v2042_v30 = vsub.f32 %v3550_v5, %v3582_v17 }
0x1ad8   :  { %2641 = vpow2.f32 %v2043_v21  ;;  %v2051_v15 = vmul.f32 1.442695, %v2039_v25 }
0x1ad9   :  { %2643 = vpow2.f32 %v2045_v23  ;;  %v2053_v31 = vmul.f32 1.442695, %v2040_v27  ;;  %v2055_v33 = vmul.f32 1.442695, %v2041_v29  ;;  %v1982_v34 = vpop.permute.xlu1 %1981  ;;  %v2057_v35 = vmul.f32 1.442695, %v2042_v30 }
0x1ada   :  { %2645 = vpow2.f32 %v2047_v24  ;;  %vm1987_vm4 = vcmp.eq.s32.totalorder %v2978_v28, %v1982_v34  ;;  %vm1988_vm5 = vcmp.eq.s32.totalorder %v1974_v19, %v1982_v34  ;;  %vm1989_vm6 = vcmp.eq.s32.totalorder %v1975_v20, %v1982_v34 }
0x1adb   :  { %2647 = vpow2.f32 %v2049_v4  ;;  %v2278_v36 = vsel %vm1987_vm4, 1.0, %v2724_v60  ;;  %v2279_v37 = vsel %vm1988_vm5, 1.0, %v2724_v60  ;;  %v1979_v40 = vpop.permute.xlu0 %1978  ;;  %vm1990_vm11 = vcmp.eq.s32.totalorder %v1976_v18, %v1982_v34 }
0x1adc   :  { %2649 = vpow2.f32 %v2051_v15  ;;  %vm1983_vm7 = vcmp.eq.s32.totalorder %v2978_v28, %v1979_v40  ;;  %vm1984_vm8 = vcmp.eq.s32.totalorder %v1974_v19, %v1979_v40  ;;  %vm1985_vm9 = vcmp.eq.s32.totalorder %v1975_v20, %v1979_v40 }
0x1add   :  { %2651 = vpow2.f32 %v2053_v31  ;;  %v2274_v43 = vsel %vm1983_vm7, 1.0, %v2724_v60  ;;  %v2275_v1 = vsel %vm1984_vm8, 1.0, %v2724_v60  ;;  %vm1986_vm10 = vcmp.eq.s32.totalorder %v1976_v18, %v1979_v40 }
0x1ade   :  { %v2276_v26 = vsel %vm1985_vm9, 1.0, %v2724_v60  ;;  %v2007_v44 = vmul.f32 %v2274_v43, %v3526_v57  ;;  %2653 = vpow2.f32 %v2055_v33  ;;  %v2008_v45 = vmul.f32 %v2275_v1, %v3532_v39 }
0x1adf   :  { %v2277_v22 = vsel %vm1986_vm10, 1.0, %v2724_v60  ;;  %v2280_v46 = vsel %vm1989_vm6, 1.0, %v2724_v60  ;;  %v2011_v48 = vmul.f32 %v2278_v36, %v3540_v63  ;;  %v2012_v49 = vmul.f32 %v2279_v37, %v3548_v3 }
0x1ae0   :  { %2655 = vpow2.f32 %v2057_v35  ;;  %v2009_v50 = vmul.f32 %v2276_v26, %v3528_v59  ;;  %v2015_v51 = vadd.f32 %v2008_v45, %v2007_v44  ;;  %v2281_v52 = vsel %vm1990_vm11, 1.0, %v2724_v60 }
0x1ae1   :  { %v2013_v54 = vmul.f32 %v2280_v46, %v3542_v0  ;;  %v2020_v56 = vadd.f32 %v2012_v49, %v2011_v48  ;;  %v2010_v58 = vmul.f32 %v2277_v22, %v3534_v41  ;;  %v2014_v39 = vmul.f32 %v2281_v52, %v3550_v5 }
0x1ae2   :  { %v2642_v53 = vpop.eup %2641  ;;  %v2016_v42 = vadd.f32 %v2015_v51, %v2009_v50  ;;  %v2272_v24 = vsel %vm1964_vm12, 1.0, %v2724_v60  ;;  %v2273_v4 = vsel %vm1965_vm13, 1.0, %v2724_v60 }
0x1ae3   :  { %v2644_v38 = vpop.eup %2643  ;;  %v2021_v62 = vadd.f32 %v2020_v56, %v2013_v54  ;;  %v2092_v33 = vsel %vm2079_vm14, %v2272_v24, 0.0 }
0x1ae4   :  { %v2646_v55 = vpop.eup %2645  ;;  %v2059_v57 = vadd.f32 %v2644_v38, %v2642_v53  ;;  %v2017_v2 = vadd.f32 %v2016_v42, %v2010_v58 }
0x1ae5   :  { %v2648_v63 = vpop.eup %2647  ;;  %v2022_v61 = vadd.f32 %v2021_v62, %v2014_v39 }
0x1ae6   :  { %v2650_v3 = vpop.eup %2649  ;;  %v2060_v59 = vadd.f32 %v2646_v55, %v2059_v57 }
0x1ae7   :  { %v2652_v6 = vpop.eup %2651 }
0x1ae8   :  { %v2061_v7 = vadd.f32 %v2648_v63, %v2060_v59  ;;  %v2064_v8 = vadd.f32 %v2652_v6, %v2650_v3  ;;  %v2654_v10 = vpop.eup %2653 }
0x1aea   :  { %2062 = vadd.xlane.f32.xlu1 %v2061_v7  ;;  %v2065_v0 = vadd.f32 %v2654_v10, %v2064_v8  ;;  %v2656_v11 = vpop.eup %2655 }
0x1aec   :  { %v2066_v12 = vadd.f32 %v2656_v11, %v2065_v0 }
0x1aee   :  { %2067 = vadd.xlane.f32.xlu0 %v2066_v12  ;;  %2018 = vadd.xlane.f32.xlu1 %v2017_v2 }
0x1af2   :  { %2023 = vadd.xlane.f32.xlu1 %v2022_v61 }
0x1b77   :  { %v2063_v41 = vpop.xlane.xlu1 %2062 }
0x1b78   :  { %2657 = vlog2.f32 %v2063_v41 }
0x1b7b   :  { %v2068_v5 = vpop.xlane.xlu0 %2067  ;;  %v2019_v16 = vpop.xlane.xlu1 %2018 }
0x1b7c   :  { %2659 = vlog2.f32 %v2068_v5 }
0x1b7f   :  { %v2024_v27 = vpop.xlane.xlu1 %2023 }
0x1b82   :  { %v2658_v13 = vpop.eup %2657 }
0x1b83   :  { %v2070_v14 = vmul.f32 0.6931472, %v2658_v13 }
0x1b85   :  { %v2073_v19 = vadd.f32 %v2070_v14, %v3572_v47  ;;  %v2093_v47 = vsel %vm2079_vm14, %v2273_v4, 0.0 }
0x1b86   :  { %v2660_v20 = vpop.eup %2659  ;;  %v2094_v18 = vadd.f32 %v2093_v47, %v2092_v33 }
0x1b87   :  { %v2072_v21 = vmul.f32 0.6931472, %v2660_v20  ;;  %v2075_v23 = vsub.f32 %v2073_v19, %v2019_v16 }
0x1b89   :  { %v2074_v25 = vadd.f32 %v2072_v21, %v3582_v17  ;;  %v2077_v29 = vmul.f32 %v2272_v24, %v2075_v23 }
0x1b8b   :  { %v2076_v30 = vsub.f32 %v2074_v25, %v2024_v27  ;;  %v2080_v31 = vsel %vm2079_vm14, %v2077_v29, 0.0 }
0x1b8d   :  { %v2078_v15 = vmul.f32 %v2273_v4, %v2076_v30 }
0x1b8f   :  { %v2081_v9 = vsel %vm2079_vm14, %v2078_v15, 0.0 }
0x1b90   :  { %v2082_v34 = vadd.f32 %v2081_v9, %v2080_v31 }
0x1b92   :  { %2083 = vadd.xlane.f32.xlu1 %v2082_v34 }
0x1b96   :  { %2095 = vadd.xlane.f32.xlu1 %v2094_v18 }
0x1b97   :  { %2684 = shalt.err (!%p2681_p9)
}
0x1b98   :  { %s3711_s5 = sld [smem:[#allocation26_spill]] }
0x1b9e   :  { %s2685_s6 = scalar_lea.hbm %s3711_s5, 1024 }
0x1b9f   :  { %p2686_p10 = scmp.ne.s32.totalorder %s3711_s5, %s2685_s6  ;;  %p2689_p11 = scmp.lt.u32.totalorder %s2685_s6, %s3711_s5 }
0x1ba1   :  { %p2691_p12 = pnand %p2689_p11, %p2686_p10 }
0x1ba3   :  { %2694 = shalt.err (!%p2691_p12)
}
0x1ba4   :  { %s2735_s3 = smov 512   ;;  %s2736_s4 = smov 32   ;;  %vm2104_vm15 = vcmp.eq.s32.totalorder %v2978_v28, 0  ;;  %vm2107_vm0 = vcmp.eq.s32.totalorder %v2978_v28, 1 }
0x1ba5   :  { %2123 = dma.vmem_to_hbm [thread:$0]  %s2118_s7, 1024, %s3711_s5, [#allocation5], %s2735_s3, %s2735_s3, %s2736_s4  }
0x1ba6   :  { %s2737_s20 = smov [#allocation6]  }
0x1ba7   :  { %s2130_s27 = sshll.u32 %s2737_s20, 4  ;;  %s2131_s27 = int_to_ptr.vmem [resolvable:$true] %s2130_s27 }
0x1ba8   :  { %s2695_s15 = scalar_lea.vmem %s2131_s27, 16  ;;  %s2699_s24 = scalar_lea.vmem %s2131_s27, 32 }
0x1ba9   :  { %p2696_p13 = scmp.ne.s32.totalorder %s2131_s27, %s2695_s15  ;;  %p2700_p0 = scmp.lt.s32.totalorder %s2131_s27, %s2131_s27 }
0x1baa   :  { %p2701_p1 = scmp.lt.s32.totalorder %s2699_s24, %s2695_s15 }
0x1bac   :  { %p2702_p2 = por %p2701_p1, %p2700_p0 }
0x1bae   :  { %p2703_p3 = pnand %p2702_p2, %p2696_p13 }
0x1c1f   :  { %v2084_v60 = vpop.xlane.xlu1 %2083 }
0x1c20   :  { %v2085_v32 = vrot.slane %v2084_v60, 4 }
0x1c22   :  { %v2086_v17 = vadd.f32 %v2085_v32, %v2084_v60 }
0x1c23   :  { %v2096_v35 = vpop.xlane.xlu1 %2095 }
0x1c24   :  { %v2087_v36 = vrot.slane %v2086_v17, 2  ;;  %v2097_v37 = vrot.slane %v2096_v35, 4 }
0x1c26   :  { %v2098_v40 = vadd.f32 %v2097_v37, %v2096_v35  ;;  %v2088_v43 = vadd.f32 %v2087_v36, %v2086_v17 }
0x1c28   :  { %v2099_v1 = vrot.slane %v2098_v40, 2  ;;  %v2089_v26 = vrot.slane %v2088_v43, 1 }
0x1c2a   :  { %v2100_v44 = vadd.f32 %v2099_v1, %v2098_v40  ;;  %v2090_v45 = vadd.f32 %v2089_v26, %v2088_v43 }
0x1c2c   :  { %2522 = vpush %v2090_v45  ;;  %v2101_v22 = vrot.slane %v2100_v44, 1 }
0x1c2e   :  { %v2102_v46 = vadd.f32 %v2101_v22, %v2100_v44 }
0x1c30   :  { %2524 = vpush %v2102_v46 }
0x1c5d   :  { %s2523_s11 = spop %2522 }
0x1c5e   :  { %v2105_v48 = vstv %s2523_s11 }
0x1c5f   :  { %v2106_v50 = vsel %vm2104_vm15, %v2105_v48, 0.0 }
0x1c61   :  { %s2525_s9 = spop %2524 }
0x1c62   :  { %v2108_v49 = vstv %s2525_s9 }
0x1c63   :  { %v2109_v51 = vsel %vm2107_vm0, %v2108_v49, 0.0 }
0x1c64   :  { %v2110_v52 = vadd.f32 %v2109_v51, %v2106_v50 }
0x1c66   :  { %2111 = vst [vmem:[#allocation6] sm:$0x1] %v2110_v52 }
0x1c67   :  { %2706 = shalt.err (!%p2703_p3)
}
0x1c68   :  { %s3712_s28 = sld [smem:[#allocation27_spill]] }
0x1c6e   :  { %s2707_s30 = scalar_lea.hbm %s3712_s28, 16 }
0x1c6f   :  { %p2708_p4 = scmp.ne.s32.totalorder %s3712_s28, %s2707_s30  ;;  %p2711_p5 = scmp.lt.u32.totalorder %s2707_s30, %s3712_s28 }
0x1c71   :  { %p2713_p6 = pnand %p2711_p5, %p2708_p4 }
0x1c73   :  { %2716 = shalt.err (!%p2713_p6)
}
0x1c74   :  { %2133 = dma.vmem_to_hbm [thread:$0]  %s2131_s27, 16, %s3712_s28, [#allocation7]  }
0x1c75   :  { %2719 = dma.done.wait [#allocation5], 1024  }
0x1c76   :  { %2720 = vsyncadd [#allocation5], 4294966272 }
0x1c77   :  { %2721 = dma.done.wait [#allocation7], 16  }
0x1c78   :  { %2722 = vsyncadd [#allocation7], 4294967280 }
0x1c79   :  { %2140 = vsyncpa [#allocation5], 1 }
0x1c7a   :  { %2141 = vsyncpa [#allocation7], 1 }

</bundles_post_ra>
